<compile_context>
chip_gen: v7x
topology: tpu7x:2x2x1
jax: 0.10.0
libtpu: 0.0.40
codegen_flags: <defaults>
</compile_context>

<pallas_src>
import functools

import jax
import jax.numpy as jnp
from jax import lax
from jax.experimental import pallas as pl
from jax.experimental.pallas import tpu as pltpu


def _round_up(x, m):
    return (x + m - 1) // m * m


# -----------------------------------------------------------------------------
# Fused kernel: 3x3 conv (padding=1) + bias + ReLU  (+ optional feat store)
#               + masked global-average-pool partial sums.
#
# Per grid step (i image, t row-tile):
#   x_ref    : [tm_halo, Cin]  bf16  halo window of the flattened padded image
#                                    (rows m = hh*wp + ww, hh over h+2 rows).
#   w_ref    : [9*Cin, Cp]     bf16  conv taps flattened as K, resident.
#   b_ref    : [1, Cp]         f32   bias, resident.
#   feat_ref : [tm, Cout]      f32   conv+ReLU rows (only in the feat variant).
#   psum_ref : [1, Cout]       f32   per-image pooled channel sums (resident
#                                    accumulator across the t axis).
#   lhs_ref  : [tm, 9*Cin]     bf16  VMEM scratch holding the im2col block.
# -----------------------------------------------------------------------------
def _make_conv_kernel(*, th, wp, w, h, cin, cout, cp, with_feat):
    tm = th * wp

    def kernel(x_ref, w_ref, b_ref, *refs):
        if with_feat:
            feat_ref, psum_ref, lhs_ref = refs
        else:
            psum_ref, lhs_ref = refs
        t = pl.program_id(1)

        # psum is a per-image accumulator, resident across the "arbitrary" t axis.
        @pl.when(t == 0)
        def _init():
            psum_ref[...] = jnp.zeros_like(psum_ref)

        # One f32 staging of the halo block so the nine statically shifted row
        # slices below are plain f32 sublane relayouts (avoids packed-bf16
        # sub-sublane shifts).  Assemble the [tm, 9*Cin] im2col block in VMEM
        # via lane-offset stores, then run ONE K=9*Cin MXU matmul (no per-tap
        # accumulator adds).
        xf = x_ref[...].astype(jnp.float32)                       # [tm_halo, Cin]
        for dy in range(3):
            for dx in range(3):
                tap = 3 * dy + dx
                piece = xf[dy * wp + dx: dy * wp + dx + tm, :]     # [tm, Cin]
                lhs_ref[:, tap * cin:(tap + 1) * cin] = piece.astype(jnp.bfloat16)

        y = jnp.dot(lhs_ref[...], w_ref[...],
                    preferred_element_type=jnp.float32)            # [tm, Cp] f32
        y = jnp.maximum(y + b_ref[...], 0.0)

        if with_feat:
            feat_ref[...] = y[:, :cout]          # unpadded (narrow) feat store

        # Global-average-pool contribution.  Width/height masks are built
        # in-kernel (no resident mask block); the row mask also handles cdiv
        # tail tiles whose rows lie past the real image.
        y3 = y.reshape(th, wp, cp)
        col = lax.broadcasted_iota(jnp.int32, (th, wp, 1), 1)
        row = lax.broadcasted_iota(jnp.int32, (th, wp, 1), 0) + t * th
        valid = jnp.logical_and(col < w, row < h)
        tile_sum = jnp.sum(jnp.where(valid, y3, 0.0), axis=(0, 1), keepdims=True)
        psum_ref[...] += tile_sum[0, :, :cout]

    return kernel


def _conv_relu_pool(x_nchw, conv_w, conv_b, *, with_feat, target_rows=4096):
    """conv3x3(pad=1)+bias+ReLU activation map (optional) and its global avg pool."""
    n, cin, h, w = x_nchw.shape
    cout = conv_w.shape[0]
    cp = _round_up(cout, 128)               # MXU-operand channel padding only
    wp = _round_up(w + 2, 8)                # padded row width (conv + sublane align)
    th = min(h, max(1, target_rows // wp))  # image rows per tile
    t_tiles = pl.cdiv(h, th)
    h_grid = t_tiles * th
    tm = th * wp
    tm_halo = tm + 2 * wp + 8               # +2*wp rows for dy taps, +8 for dx/align

    # NCHW -> NHWC bf16, zero-pad 1 row top/bottom, 1 col left, wp-w-1 cols
    # right, flatten (row, col) -> m, and pad the tail so every halo window is
    # in bounds.
    x_nhwc = jnp.transpose(x_nchw, (0, 2, 3, 1)).astype(jnp.bfloat16)
    xpad = jnp.pad(x_nhwc, ((0, 0), (1, 1), (1, wp - w - 1), (0, 0)))
    xflat = xpad.reshape(n, (h + 2) * wp, cin)
    total_rows = h_grid * wp + 2 * wp + 8
    xflat = jnp.pad(xflat, ((0, 0), (0, total_rows - (h + 2) * wp), (0, 0)))
    # Overlapping halo windows (single input copy, ~1 + 2/th duplication) so
    # each grid step reads one contiguous block; dy/dx shifts happen in-kernel.
    xw = jnp.concatenate(
        [xflat[:, t * tm: t * tm + tm_halo, :][:, None] for t in range(t_tiles)],
        axis=1).reshape(n * t_tiles, tm_halo, cin)

    # [Cout, Cin, 3, 3] -> [9*Cin, Cp] with (dy, dx, ci) flattened as K.
    w_flat = jnp.transpose(conv_w, (2, 3, 1, 0)).reshape(9 * cin, cout)
    w_flat = jnp.pad(w_flat, ((0, 0), (0, cp - cout))).astype(jnp.bfloat16)
    b2d = jnp.pad(conv_b.reshape(1, cout).astype(jnp.float32),
                  ((0, 0), (0, cp - cout)))

    kernel = _make_conv_kernel(th=th, wp=wp, w=w, h=h, cin=cin, cout=cout,
                               cp=cp, with_feat=with_feat)

    psum_shape = jax.ShapeDtypeStruct((n, 1, cout), jnp.float32)
    psum_spec = pl.BlockSpec((None, 1, cout), lambda i, t: (i, 0, 0))
    if with_feat:
        out_shape = (jax.ShapeDtypeStruct((n, h_grid * wp, cout), jnp.float32),
                     psum_shape)
        out_specs = (pl.BlockSpec((None, tm, cout), lambda i, t: (i, t, 0)),
                     psum_spec)
    else:
        out_shape = psum_shape
        out_specs = psum_spec

    result = pl.pallas_call(
        kernel,
        out_shape=out_shape,
        grid=(n, t_tiles),
        in_specs=[
            pl.BlockSpec((None, tm_halo, cin),
                         lambda i, t: (i * t_tiles + t, 0, 0)),
            pl.BlockSpec((9 * cin, cp), lambda i, t: (0, 0)),    # resident
            pl.BlockSpec((1, cp), lambda i, t: (0, 0)),          # resident
        ],
        out_specs=out_specs,
        scratch_shapes=[pltpu.VMEM((tm, 9 * cin), jnp.bfloat16)],
        compiler_params=pltpu.CompilerParams(
            dimension_semantics=("parallel", "arbitrary"),
            vmem_limit_bytes=48 * 1024 * 1024,
        ),
    )(xw, w_flat, b2d)

    if with_feat:
        feat_flat, psum = result
        # Pad rows/cols of feat_flat hold garbage; crop before exposing it.
        feat_nchw = jnp.transpose(
            feat_flat.reshape(n, h_grid, wp, cout)[:, :h, :w, :], (0, 3, 1, 2))
    else:
        psum = result
        feat_nchw = None
    pooled = psum[:, 0, :] / float(h * w)
    return feat_nchw, pooled


def model_features(x_nchw, conv_w, conv_b):
    """Model.features / Model.get_activations: GradCam activation map (NCHW)."""
    feat, _ = _conv_relu_pool(x_nchw, conv_w, conv_b, with_feat=True)
    return feat


def model_forward(x_nchw, params, latent=False):
    """Model.forward: features -> global avg pool -> linear logits."""
    if latent:
        feat, pooled = _conv_relu_pool(
            x_nchw, params["conv_w"], params["conv_b"], with_feat=True)
    else:
        # Logits-only path: pool-only kernel, no activation-map writeback.
        feat, pooled = _conv_relu_pool(
            x_nchw, params["conv_w"], params["conv_b"], with_feat=False)
    logits = pooled @ params["fc_w"].T + params["fc_b"][None, :]
    if latent:
        return logits, feat
    return logits


def _reference_forward(x_nchw, params):
    """Pure-JAX reference (same bf16 operand quantization) for verification."""
    xb = x_nchw.astype(jnp.bfloat16)
    wb = params["conv_w"].astype(jnp.bfloat16)
    y = lax.conv_general_dilated(
        xb, wb, window_strides=(1, 1), padding="SAME",
        dimension_numbers=("NCHW", "OIHW", "NCHW"),
        preferred_element_type=jnp.float32)
    y = jnp.maximum(y + params["conv_b"][None, :, None, None], 0.0)
    pooled = jnp.mean(y, axis=(2, 3))
    logits = pooled @ params["fc_w"].T + params["fc_b"][None, :]
    return logits, y


if __name__ == "__main__":
    key = jax.random.PRNGKey(0)
    k_x, k_cw, k_cb, k_fw, k_fb = jax.random.split(key, 5)

    N, C_IN, H, W = 2, 4, 16, 16
    C_OUT, NUM_CLASSES = 8, 10

    x = jax.random.normal(k_x, (N, C_IN, H, W), dtype=jnp.float32)
    params = {
        "conv_w": 0.1 * jax.random.normal(k_cw, (C_OUT, C_IN, 3, 3), jnp.float32),
        "conv_b": 0.1 * jax.random.normal(k_cb, (C_OUT,), jnp.float32),
        "fc_w": 0.1 * jax.random.normal(k_fw, (NUM_CLASSES, C_OUT), jnp.float32),
        "fc_b": 0.1 * jax.random.normal(k_fb, (NUM_CLASSES,), jnp.float32),
    }

    # latent=True path (feat + logits) and latent=False path (pool-only kernel).
    logits_latent, activation_map = jax.jit(
        functools.partial(model_forward, latent=True))(x, params)
    logits = jax.jit(model_forward)(x, params)
    jax.block_until_ready((logits_latent, activation_map, logits))

    assert logits.shape == (N, NUM_CLASSES)
    assert logits_latent.shape == (N, NUM_CLASSES)
    assert activation_map.shape == (N, C_OUT, H, W)

    ref_logits, ref_act = _reference_forward(x, params)
    for name, got in (("logits", logits), ("logits_latent", logits_latent)):
        assert jnp.allclose(got, ref_logits, atol=1e-3, rtol=1e-3), (
            f"{name} mismatch: max abs err {jnp.max(jnp.abs(got - ref_logits))}")
    assert jnp.allclose(activation_map, ref_act, atol=1e-3, rtol=1e-3), (
        f"activation mismatch: max abs err "
        f"{jnp.max(jnp.abs(activation_map - ref_act))}")

    print("KERNEL_OK")
</pallas_src>

<mosaic_0001>
module attributes {stable_mosaic.version = 11 : i64} {
  func.func @kernel(%arg0: i32, %arg1: i32, %arg2: memref<1x440x4xbf16, #tpu.memory_space<vmem>>, %arg3: memref<36x128xbf16, #tpu.memory_space<vmem>>, %arg4: memref<1x128xf32, #tpu.memory_space<vmem>>, %arg5: memref<1x384x8xf32, #tpu.memory_space<vmem>>, %arg6: memref<1x1x8xf32, #tpu.memory_space<vmem>>, %arg7: memref<384x36xbf16, #tpu.memory_space<vmem>>) attributes {dimension_semantics = [#tpu.dimension_semantics<parallel>, #tpu.dimension_semantics<arbitrary>], iteration_bounds = array<i64: 2, 1>, scalar_prefetch = 0 : i64, scratch_operands = 1 : i64, tpu.core_type = #tpu.core_type<tc>, window_params = [{transform_indices = @transform_0, window_bounds = array<i64: 1, 440, 4>}, {pipeline_mode = #tpu.pipeline_mode<synchronous>, transform_indices = @transform_1, window_bounds = array<i64: 36, 128>}, {pipeline_mode = #tpu.pipeline_mode<synchronous>, transform_indices = @transform_2, window_bounds = array<i64: 1, 128>}, {transform_indices = @transform_3, window_bounds = array<i64: 1, 384, 8>}, {transform_indices = @transform_4, window_bounds = array<i64: 1, 1, 8>}]} {
    %c0_i32 = arith.constant 0 : i32
    %0 = arith.cmpi eq, %arg1, %c0_i32 : i32
    %1 = arith.extui %0 : i1 to i32
    %c0_i32_0 = arith.constant 0 : i32
    %2 = arith.cmpi ne, %1, %c0_i32_0 : i32
    scf.if %2 {
      %cst_33 = arith.constant 0.000000e+00 : f32
      %70 = vector.broadcast %cst_33 : f32 to vector<1x8xf32>
      %c0_34 = arith.constant 0 : index
      %c0_35 = arith.constant 0 : index
      %c0_36 = arith.constant 0 : index
      %71 = vector.load %arg6[%c0_34, %c0_35, %c0_36] : memref<1x1x8xf32, #tpu.memory_space<vmem>>, vector<1x1x8xf32>
      %72 = vector.shape_cast %71 : vector<1x1x8xf32> to vector<1x8xf32>
      %73 = vector.shape_cast %70 : vector<1x8xf32> to vector<1x1x8xf32>
      tpu.vector_store %arg6[%c0_34, %c0_35, %c0_36], %73 {strides = array<i32>} : memref<1x1x8xf32, #tpu.memory_space<vmem>>, vector<1x1x8xf32>,
    } else {
    }
    %c0 = arith.constant 0 : index
    %c0_1 = arith.constant 0 : index
    %c0_2 = arith.constant 0 : index
    %3 = vector.load %arg2[%c0, %c0_1, %c0_2] : memref<1x440x4xbf16, #tpu.memory_space<vmem>>, vector<1x440x4xbf16>
    %4 = vector.shape_cast %3 : vector<1x440x4xbf16> to vector<440x4xbf16>
    %5 = arith.extf %4 : vector<440x4xbf16> to vector<440x4xf32>
    %6 = vector.extract_strided_slice %5 {offsets = [0, 0], sizes = [384, 4], strides = [1, 1]} : vector<440x4xf32> to vector<384x4xf32>
    %7 = arith.truncf %6 : vector<384x4xf32> to vector<384x4xbf16>
    %c0_3 = arith.constant 0 : index
    %c0_4 = arith.constant 0 : index
    %8 = vector.load %arg7[%c0_3, %c0_4] : memref<384x36xbf16, #tpu.memory_space<vmem>>, vector<384x4xbf16>
    tpu.vector_store %arg7[%c0_3, %c0_4], %7 {strides = array<i32>} : memref<384x36xbf16, #tpu.memory_space<vmem>>, vector<384x4xbf16>,
    %9 = vector.extract_strided_slice %5 {offsets = [1, 0], sizes = [384, 4], strides = [1, 1]} : vector<440x4xf32> to vector<384x4xf32>
    %10 = arith.truncf %9 : vector<384x4xf32> to vector<384x4xbf16>
    %c0_5 = arith.constant 0 : index
    %c4 = arith.constant 4 : index
    %11 = vector.load %arg7[%c0_5, %c4] : memref<384x36xbf16, #tpu.memory_space<vmem>>, vector<384x4xbf16>
    tpu.vector_store %arg7[%c0_5, %c4], %10 {strides = array<i32>} : memref<384x36xbf16, #tpu.memory_space<vmem>>, vector<384x4xbf16>,
    %12 = vector.extract_strided_slice %5 {offsets = [2, 0], sizes = [384, 4], strides = [1, 1]} : vector<440x4xf32> to vector<384x4xf32>
    %13 = arith.truncf %12 : vector<384x4xf32> to vector<384x4xbf16>
    %c0_6 = arith.constant 0 : index
    %c8 = arith.constant 8 : index
    %14 = vector.load %arg7[%c0_6, %c8] : memref<384x36xbf16, #tpu.memory_space<vmem>>, vector<384x4xbf16>
    tpu.vector_store %arg7[%c0_6, %c8], %13 {strides = array<i32>} : memref<384x36xbf16, #tpu.memory_space<vmem>>, vector<384x4xbf16>,
    %15 = vector.extract_strided_slice %5 {offsets = [24, 0], sizes = [384, 4], strides = [1, 1]} : vector<440x4xf32> to vector<384x4xf32>
    %16 = arith.truncf %15 : vector<384x4xf32> to vector<384x4xbf16>
    %c0_7 = arith.constant 0 : index
    %c12 = arith.constant 12 : index
    %17 = vector.load %arg7[%c0_7, %c12] : memref<384x36xbf16, #tpu.memory_space<vmem>>, vector<384x4xbf16>
    tpu.vector_store %arg7[%c0_7, %c12], %16 {strides = array<i32>} : memref<384x36xbf16, #tpu.memory_space<vmem>>, vector<384x4xbf16>,
    %18 = vector.extract_strided_slice %5 {offsets = [25, 0], sizes = [384, 4], strides = [1, 1]} : vector<440x4xf32> to vector<384x4xf32>
    %19 = arith.truncf %18 : vector<384x4xf32> to vector<384x4xbf16>
    %c0_8 = arith.constant 0 : index
    %c16 = arith.constant 16 : index
    %20 = vector.load %arg7[%c0_8, %c16] : memref<384x36xbf16, #tpu.memory_space<vmem>>, vector<384x4xbf16>
    tpu.vector_store %arg7[%c0_8, %c16], %19 {strides = array<i32>} : memref<384x36xbf16, #tpu.memory_space<vmem>>, vector<384x4xbf16>,
    %21 = vector.extract_strided_slice %5 {offsets = [26, 0], sizes = [384, 4], strides = [1, 1]} : vector<440x4xf32> to vector<384x4xf32>
    %22 = arith.truncf %21 : vector<384x4xf32> to vector<384x4xbf16>
    %c0_9 = arith.constant 0 : index
    %c20 = arith.constant 20 : index
    %23 = vector.load %arg7[%c0_9, %c20] : memref<384x36xbf16, #tpu.memory_space<vmem>>, vector<384x4xbf16>
    tpu.vector_store %arg7[%c0_9, %c20], %22 {strides = array<i32>} : memref<384x36xbf16, #tpu.memory_space<vmem>>, vector<384x4xbf16>,
    %24 = vector.extract_strided_slice %5 {offsets = [48, 0], sizes = [384, 4], strides = [1, 1]} : vector<440x4xf32> to vector<384x4xf32>
    %25 = arith.truncf %24 : vector<384x4xf32> to vector<384x4xbf16>
    %c0_10 = arith.constant 0 : index
    %c24 = arith.constant 24 : index
    %26 = vector.load %arg7[%c0_10, %c24] : memref<384x36xbf16, #tpu.memory_space<vmem>>, vector<384x4xbf16>
    tpu.vector_store %arg7[%c0_10, %c24], %25 {strides = array<i32>} : memref<384x36xbf16, #tpu.memory_space<vmem>>, vector<384x4xbf16>,
    %27 = vector.extract_strided_slice %5 {offsets = [49, 0], sizes = [384, 4], strides = [1, 1]} : vector<440x4xf32> to vector<384x4xf32>
    %28 = arith.truncf %27 : vector<384x4xf32> to vector<384x4xbf16>
    %c0_11 = arith.constant 0 : index
    %c28 = arith.constant 28 : index
    %29 = vector.load %arg7[%c0_11, %c28] : memref<384x36xbf16, #tpu.memory_space<vmem>>, vector<384x4xbf16>
    tpu.vector_store %arg7[%c0_11, %c28], %28 {strides = array<i32>} : memref<384x36xbf16, #tpu.memory_space<vmem>>, vector<384x4xbf16>,
    %30 = vector.extract_strided_slice %5 {offsets = [50, 0], sizes = [384, 4], strides = [1, 1]} : vector<440x4xf32> to vector<384x4xf32>
    %31 = arith.truncf %30 : vector<384x4xf32> to vector<384x4xbf16>
    %c0_12 = arith.constant 0 : index
    %c32 = arith.constant 32 : index
    %32 = vector.load %arg7[%c0_12, %c32] : memref<384x36xbf16, #tpu.memory_space<vmem>>, vector<384x4xbf16>
    tpu.vector_store %arg7[%c0_12, %c32], %31 {strides = array<i32>} : memref<384x36xbf16, #tpu.memory_space<vmem>>, vector<384x4xbf16>,
    %c0_13 = arith.constant 0 : index
    %c0_14 = arith.constant 0 : index
    %33 = vector.load %arg7[%c0_13, %c0_14] : memref<384x36xbf16, #tpu.memory_space<vmem>>, vector<384x36xbf16>
    %c0_15 = arith.constant 0 : index
    %c0_16 = arith.constant 0 : index
    %34 = vector.load %arg3[%c0_15, %c0_16] : memref<36x128xbf16, #tpu.memory_space<vmem>>, vector<36x128xbf16>
    %cst = arith.constant dense<0.000000e+00> : vector<384x128xf32>
    %35 = tpu.matmul %33, %34, %cst {dimension_numbers = #tpu.dot_dimension_numbers<[1], [0], [0], [1], [0, 0, 1, 1], [], []>} : vector<384x36xbf16>, vector<36x128xbf16>, vector<384x128xf32> -> vector<384x128xf32>
    %c0_17 = arith.constant 0 : index
    %c0_18 = arith.constant 0 : index
    %36 = vector.load %arg4[%c0_17, %c0_18] : memref<1x128xf32, #tpu.memory_space<vmem>>, vector<1x128xf32>
    %37 = vector.broadcast %36 : vector<1x128xf32> to vector<384x128xf32>
    %38 = arith.addf %35, %37 : vector<384x128xf32>
    %cst_19 = arith.constant 0.000000e+00 : f32
    %39 = vector.broadcast %cst_19 : f32 to vector<384x128xf32>
    %40 = arith.maximumf %38, %39 : vector<384x128xf32>
    %41 = vector.extract_strided_slice %40 {offsets = [0, 0], sizes = [384, 8], strides = [1, 1]} : vector<384x128xf32> to vector<384x8xf32>
    %c0_20 = arith.constant 0 : index
    %c0_21 = arith.constant 0 : index
    %c0_22 = arith.constant 0 : index
    %42 = vector.load %arg5[%c0_20, %c0_21, %c0_22] : memref<1x384x8xf32, #tpu.memory_space<vmem>>, vector<1x384x8xf32>
    %43 = vector.shape_cast %42 : vector<1x384x8xf32> to vector<384x8xf32>
    %44 = vector.shape_cast %41 : vector<384x8xf32> to vector<1x384x8xf32>
    tpu.vector_store %arg5[%c0_20, %c0_21, %c0_22], %44 {strides = array<i32>} : memref<1x384x8xf32, #tpu.memory_space<vmem>>, vector<1x384x8xf32>,
    %45 = vector.shape_cast %40 : vector<384x128xf32> to vector<16x24x128xf32>
    %46 = tpu.iota {dimensions = array<i32: 1>} : vector<16x24x1xi32>
    %47 = tpu.iota {dimensions = array<i32: 0>} : vector<16x24x1xi32>
    %c16_i32 = arith.constant 16 : i32
    %48 = arith.muli %arg1, %c16_i32 : i32
    %49 = vector.broadcast %48 : i32 to vector<16x24x1xi32>
    %50 = arith.addi %47, %49 : vector<16x24x1xi32>
    %c16_i32_23 = arith.constant 16 : i32
    %51 = vector.broadcast %c16_i32_23 : i32 to vector<16x24x1xi32>
    %52 = arith.cmpi slt, %46, %51 : vector<16x24x1xi32>
    %c16_i32_24 = arith.constant 16 : i32
    %53 = vector.broadcast %c16_i32_24 : i32 to vector<16x24x1xi32>
    %54 = arith.cmpi slt, %50, %53 : vector<16x24x1xi32>
    %55 = arith.andi %52, %54 : vector<16x24x1xi1>
    %cst_25 = arith.constant 0.000000e+00 : f32
    %56 = vector.shape_cast %55 : vector<16x24x1xi1> to vector<16x24x1xi1>
    %57 = vector.broadcast %56 : vector<16x24x1xi1> to vector<16x24x128xi1>
    %58 = vector.broadcast %cst_25 : f32 to vector<16x24x128xf32>
    %59 = arith.select %57, %45, %58 : vector<16x24x128xi1>, vector<16x24x128xf32>
    %cst_26 = arith.constant dense<0.000000e+00> : vector<128xf32>
    %60 = vector.multi_reduction <add>, %59, %cst_26 [0, 1] : vector<16x24x128xf32> to vector<128xf32>
    %61 = vector.shape_cast %60 : vector<128xf32> to vector<1x1x128xf32>
    %c0_27 = arith.constant 0 : index
    %c0_28 = arith.constant 0 : index
    %c0_29 = arith.constant 0 : index
    %62 = vector.load %arg6[%c0_27, %c0_28, %c0_29] : memref<1x1x8xf32, #tpu.memory_space<vmem>>, vector<1x1x8xf32>
    %63 = vector.shape_cast %62 : vector<1x1x8xf32> to vector<1x8xf32>
    %64 = vector.extract_strided_slice %61 {offsets = [0, 0, 0], sizes = [1, 1, 8], strides = [1, 1, 1]} : vector<1x1x128xf32> to vector<1x1x8xf32>
    %65 = vector.shape_cast %64 : vector<1x1x8xf32> to vector<1x8xf32>
    %66 = arith.addf %63, %65 : vector<1x8xf32>
    %c0_30 = arith.constant 0 : index
    %c0_31 = arith.constant 0 : index
    %c0_32 = arith.constant 0 : index
    %67 = vector.load %arg6[%c0_30, %c0_31, %c0_32] : memref<1x1x8xf32, #tpu.memory_space<vmem>>, vector<1x1x8xf32>
    %68 = vector.shape_cast %67 : vector<1x1x8xf32> to vector<1x8xf32>
    %69 = vector.shape_cast %66 : vector<1x8xf32> to vector<1x1x8xf32>
    tpu.vector_store %arg6[%c0_30, %c0_31, %c0_32], %69 {strides = array<i32>} : memref<1x1x8xf32, #tpu.memory_space<vmem>>, vector<1x1x8xf32>,
    return
  }
  func.func @transform_0(%arg0: i32, %arg1: i32) -> (i32, i32, i32) {
    %c1_i32 = arith.constant 1 : i32
    %0 = arith.muli %arg0, %c1_i32 : i32
    %1 = arith.addi %0, %arg1 : i32
    %c0_i32 = arith.constant 0 : i32
    %c0_i32_0 = arith.constant 0 : i32
    %c0_i32_1 = arith.constant 0 : i32
    return %1, %c0_i32, %c0_i32_0 : i32, i32, i32
  }
  func.func @transform_1(%arg0: i32, %arg1: i32) -> (i32, i32) {
    %c0_i32 = arith.constant 0 : i32
    %c0_i32_0 = arith.constant 0 : i32
    %c0_i32_1 = arith.constant 0 : i32
    return %c0_i32, %c0_i32_0 : i32, i32
  }
  func.func @transform_2(%arg0: i32, %arg1: i32) -> (i32, i32) {
    %c0_i32 = arith.constant 0 : i32
    %c0_i32_0 = arith.constant 0 : i32
    %c0_i32_1 = arith.constant 0 : i32
    return %c0_i32, %c0_i32_0 : i32, i32
  }
  func.func @transform_3(%arg0: i32, %arg1: i32) -> (i32, i32, i32) {
    %c0_i32 = arith.constant 0 : i32
    %c0_i32_0 = arith.constant 0 : i32
    return %arg0, %arg1, %c0_i32 : i32, i32, i32
  }
  func.func @transform_4(%arg0: i32, %arg1: i32) -> (i32, i32, i32) {
    %c0_i32 = arith.constant 0 : i32
    %c0_i32_0 = arith.constant 0 : i32
    %c0_i32_1 = arith.constant 0 : i32
    return %arg0, %c0_i32, %c0_i32_0 : i32, i32, i32
  }
}

</mosaic_0001>

<bundles_post_ra>
// kernel: model_forward.1
= control target key start
LH: loop header
LB: loop body
LE: loop exit
PB: predicated region body
PF: predicated region fallthrough
CT: control target
= control target key end

     0   :  { %s2946_s15 = smov 0   ;;  %s2948_s16 = smov 0   ;;  %s4497_s0 = inlined_call_operand.vmem [shape: bf16[2,440,4], index: 0, kind: input, shape index: {}]   ;;  %s4498_s1 = inlined_call_operand.vmem [shape: bf16[36,128], index: 1, kind: input, shape index: {}]   ;;  %s4499_s2 = inlined_call_operand.vmem [shape: f32[1,128], index: 2, kind: input, shape index: {}]   ;;  %s4500_s3 = inlined_call_operand.vmem [shape: f32[2,384,8], index: 3, kind: output, shape index: {0}]   ;;  %s4501_s4 = inlined_call_operand.vmem [shape: f32[2,1,8], index: 4, kind: output, shape index: {1}]  }
   0x1   :  { %s2950_s17 = smov 0  }
   0x2 LB: > { %s27_s18 = sadd.s32 1, %s2906_s16  ;;  %p2641_p0 = scmp.ge.s32.totalorder %s2910_s17, 1  ;;  %s2910_s17 = sphi %s2950_s17, %s15_s17   ;;  %s2906_s16 = sphi %s2948_s16, %s4507_s16   ;;  %s2902_s15 = sphi %s2946_s15, %s4506_s15  }
   0x3   : > { %p29_p1 = scmp.ge.s32.totalorder %s27_s18, 2  ;;  %p183_p2 = scmp.lt.s32.totalorder %s2910_s17, 3 }
   0x5   : > { %s4509_s18 = smov (%p29_p1, %s27_s18), 0  ;;  %p184_p3 = pnand %p2641_p0, %p183_p2 }
   0x6   : > { %p218_p4 = scmp.lt.s32.totalorder (!%p184_p3), %s2902_s15, 1  ;;  %vm723_vm0 = vcmask (!%p184_p3), 1046528   ;;  %vm378_vm1 = vcmask (!%p184_p3), 31744   ;;  %vm404_vm2 = vsmask.f32 (!%p184_p3), 7424  ;;  %s2912_s23 = smov (!%p184_p3), 12  }
   0x7   : > { %187 = sbr.rel (%p184_p3) target bundleno = 765 (0x2fd), region = 32  ;;  %s2913_s24 = smov (!%p184_p3), 20   ;;  %vm1916_vm3 = vcmask (!%p184_p3), 1041408   ;;  %vm673_vm4 = vcmask (!%p184_p3), 64544   ;;  %vm845_vm5 = vcmask (!%p184_p3), 97344   ;;  %vm990_vm6 = vcmask (!%p184_p3), 130144  }
   0x8   : > { %s2914_s25 = smov (!%p184_p3), 8   ;;  %s2915_s26 = smov (!%p184_p3), 4   ;;  %vm1284_vm7 = vcmask (!%p184_p3), 162944   ;;  %vm1431_vm8 = vcmask (!%p184_p3), 195744   ;;  %vm1534_vm9 = vcmask (!%p184_p3), 228544   ;;  %vm1661_vm10 = vcmask (!%p184_p3), 261344  }
   0x9   : > { %s2916_s29 = smov (!%p184_p3), 16   ;;  %s2917_s6 = smov (!%p184_p3), 24   ;;  %vm1767_vm11 = vcmask (!%p184_p3), 294144   ;;  %vm1843_vm12 = vcmask (!%p184_p3), 293888   ;;  %vm2193_vm13 = vcmask (!%p184_p3), 64512   ;;  %vm242_vm14 = vcmask (!%p184_p3), 57344  }
   0xa   : > { %s2918_s7 = smov (!%p184_p3), 28   ;;  %s2919_s8 = smov (!%p184_p3), 32  }
   0xe   : > { %s4511_s15 = smov (!%p218_p4, %s2902_s15), 1 }
   0xf   : > { %s2817_s19 = smul.u32 220, %s4511_s15 }
  0x10   : > { %s2818_s11 = smul.u32 384, %s4511_s15 }
  0x11   : > { %s2970_s22 = scalar_lea.vmem %s4497_s0, %s2817_s19 }
  0x12   : > { %v249_v0 = vld [vmem:[%s2970_s22 + $0x14] sm:$0xf]  ;;  %v250_v1 = vld [vmem:[%s2970_s22 + $0x18] sm:$0xf]  ;;  %v251_v2 = vld [vmem:[%s2970_s22 + $0x1c] sm:$0xf]  ;;  %s4234_s20 = scalar_lea.vmem %s4500_s3, %s2818_s11 }
  0x13   : > { %v252_v3 = vld [vmem:[%s2970_s22 + $0x20] sm:$0xf]  ;;  %v2976_v4 = vcombine.low %v250_v1, %v251_v2  ;;  %v2670_v5 = vcombine.low %v249_v0, %v250_v1  ;;  %v247_v6 = vld [vmem:[%s2970_s22 + $0xc] sm:$0xf]  ;;  %v248_v7 = vld [vmem:[%s2970_s22 + $0x10] sm:$0xf] }
  0x14   : > { %v2980_v8 = vcombine.low %v251_v2, %v252_v3  ;;  %v2982_v9 = vcombine.low %v248_v7, %v249_v0  ;;  %v2669_v10 = vcombine.low %v247_v6, %v248_v7  ;;  %v246_v11 = vld [vmem:[%s2970_s22 + $0x8] sm:$0xf]  ;;  %v2858_v14 = vld [vmem:[%s2970_s22] sm:$0xff]   ;;  %v3005_v30 = vld [vmem:[%s2970_s22 + $0x2c] sm:$0xf] }
  0x15   : > { %920 = vrot.lane.b32.xlu1 %v2670_v5, %s2912_s23  ;;  %v2645_v12 = vcombine.low %v246_v11, %v247_v6  ;;  %v1311_v13 = vrot.slane %v2670_v5, 1  ;;  %v1024_v15 = vshll.u32 %v2670_v5, 16  ;;  %v1028_v16 = vshrl.u32 %v2670_v5, 16  ;;  %382 = vst.msk [vmem:[#allocation2 + $0x18] sm:$0xff] %vm378_vm1, %v2976_v4  ;;  %v2996_v25 = vld [vmem:[%s2970_s22 + $0x24] sm:$0xf] }
  0x16   : > { %918 = vrot.lane.b32.xlu0 %v2669_v10, %s2912_s23  ;;  %v1310_v17 = vrot.slane %v2669_v10, 1  ;;  %v727_v18 = vrot.slane %v2982_v9, 1  ;;  %v1313_v19 = vrot.slane %v2980_v8, 1  ;;  %v421_v20 = vshll.u32 %v2982_v9, 16  ;;  %381 = vst.msk [vmem:[#allocation2 + $0x10] sm:$0xff] %vm378_vm1, %v2982_v9  ;;  %379 = vst.msk [vmem:[#allocation2] sm:$0xff] %vm378_vm1, %v2858_v14 }
  0x17   : > { %v724_v21 = vrot.slane %v2858_v14, 1  ;;  %v725_v22 = vrot.slane %v2645_v12, 1  ;;  %v406_v23 = vshrl.u32 %v2858_v14, 16  ;;  %v408_v24 = vshll.u32 %v2858_v14, 16  ;;  %380 = vst.msk [vmem:[#allocation2 + $0x8] sm:$0xff] %vm378_vm1, %v2645_v12  ;;  %v2876_v0 = vld [vmem:[%s4498_s1] sm:$0xff]  }
  0x18   : > { %v1312_v26 = vsel %vm723_vm0, %v1310_v17, %v1311_v13  ;;  %v413_v27 = vshll.u32 %v2645_v12, 16  ;;  %v417_v28 = vshrl.u32 %v2645_v12, 16  ;;  %v3002_v29 = vld [vmem:[%s2970_s22 + $0x28] sm:$0xf]  ;;  %v3011_v34 = vrot.slane %v421_v20, 1  ;;  %2755 = vmatprep.subr.bf16.mxu0 %v2876_v0  ;;  %2809 = vmatprep.subr.bf16.mxu1 %v2876_v0 }
  0x19   : > { %v726_v31 = vsel %vm723_vm0, %v724_v21, %v725_v22  ;;  %v728_v32 = vsel %vm723_vm0, %v725_v22, %v727_v18  ;;  %v410_v33 = vrot.slane %v408_v24, 1  ;;  %v1026_v36 = vrot.slane %v1024_v15, 1  ;;  %v256_v53 = vld [vmem:[%s2970_s22 + $0x30] sm:$0xf]  ;;  %v3041_v54 = vld [vmem:[%s2970_s22 + $0x34] sm:$0xf]  ;;  %2756 = vmatpush3.bf16.msra.mxu0 %v2876_v0  ;;  %2812 = vmatpush3.bf16.msra.mxu1 %v2876_v0 }
  0x1a   : > { %1359 = vrot.lane.b32.xlu0 %v1312_v26, %s2913_s24  ;;  %773 = vrot.lane.b32.xlu1 %v726_v31, %s2914_s25  ;;  %v415_v35 = vrot.slane %v413_v27, 1  ;;  %v1032_v37 = vshll.u32 %v2980_v8, 16  ;;  %v1017_v38 = vshrl.u32 %v2669_v10, 16  ;;  %v1019_v40 = vshll.u32 %v2669_v10, 16  ;;  %v3044_v55 = vld [vmem:[%s2970_s22 + $0x38] sm:$0xf] }
  0x1b   : > { %v411_v39 = vor.u32 %v410_v33, %v406_v23  ;;  %v3017_v41 = vcombine.low %v252_v3, %v2996_v25  ;;  %v3021_v42 = vcombine.low %v3002_v29, %v3005_v30  ;;  %v1314_v46 = vsel %vm723_vm0, %v1311_v13, %v1313_v19  ;;  %v3047_v56 = vld [vmem:[%s2970_s22 + $0x3c] sm:$0xf]  ;;  %v2877_v10 = vld [vmem:[%s4498_s1 + $0x8] sm:$0xff]   ;;  %v261_v11 = vld [vmem:[%s2970_s22 + $0x44] sm:$0xf] }
  0x1c   : > { %v419_v43 = vor.u32 %v417_v28, %v415_v35  ;;  %v1021_v45 = vrot.slane %v1019_v40, 1  ;;  %v429_v48 = vshll.u32 %v2976_v4, 16  ;;  %v1030_v50 = vor.u32 %v1028_v16, %v1026_v36  ;;  %v262_v12 = vld [vmem:[%s2970_s22 + $0x48] sm:$0xf]  ;;  %v263_v13 = vld [vmem:[%s2970_s22 + $0x4c] sm:$0xf]  ;;  %2757 = vmatprep.subr.bf16.mxu0 %v2877_v10  ;;  %2810 = vmatprep.subr.bf16.mxu1 %v2877_v10 }
  0x1d   : > { %v416_v44 = vsel %vm404_vm2, %v411_v39, %v415_v35  ;;  %383 = vst.msk [vmem:[#allocation2 + $0x20] sm:$0xff] %vm378_vm1, %v3017_v41  ;;  %384 = vst.msk [vmem:[#allocation2 + $0x28] sm:$0xff] %vm378_vm1, %v3021_v42  ;;  %v437_v47 = vshll.u32 %v3017_v41, 16  ;;  %v3037_v51 = vrot.slane %v1032_v37, 1  ;;  %v441_v58 = vshrl.u32 %v3017_v41, 16  ;;  %2758 = vmatpush3.bf16.msra.mxu0 %v2877_v10  ;;  %2813 = vmatpush3.bf16.msra.mxu1 %v2877_v10 }
  0x1e   : > { %775 = vrot.lane.b32.xlu1 %v728_v32, %s2914_s25  ;;  %601 = vrot.lane.b32.xlu0 %v416_v44, %s2915_s26  ;;  %v424_v49 = vsel %vm404_vm2, %v419_v43, %v3011_v34  ;;  %v1022_v52 = vor.u32 %v1021_v45, %v1017_v38  ;;  %v445_v59 = vshll.u32 %v3021_v42, 16  ;;  %v431_v60 = vrot.slane %v429_v48, 1  ;;  %v3095_v21 = vld [vmem:[%s2970_s22 + $0x40] sm:$0xf]  ;;  %v264_v28 = vld [vmem:[%s2970_s22 + $0x50] sm:$0xf] }
  0x1f   : > { %v439_v57 = vrot.slane %v437_v47, 1  ;;  %v1035_v61 = vsel %vm404_vm2, %v1030_v50, %v3037_v51  ;;  %v433_v63 = vshrl.u32 %v2976_v4, 16  ;;  %v3061_v1 = vcombine.low %v256_v53, %v3041_v54  ;;  %v3118_v31 = vld [vmem:[%s2970_s22 + $0x54] sm:$0xf]  ;;  %v3131_v35 = vld [vmem:[%s2970_s22 + $0x5c] sm:$0xf] }
  0x20   : > { %v1027_v62 = vsel %vm404_vm2, %v1022_v52, %v1026_v36  ;;  %v3065_v2 = vcombine.low %v3044_v55, %v3047_v56  ;;  %v3073_v5 = vrot.slane %v445_v59, 1  ;;  %v425_v7 = vshrl.u32 %v2982_v9, 16  ;;  %v3148_v38 = vld [vmem:[%s2970_s22 + $0x64] sm:$0xf]  ;;  %v271_v59 = vld [vmem:[%s2970_s22 + $0x6c] sm:$0xf] }
  0x21   : > { %385 = vst.msk [vmem:[#allocation2 + $0x30] sm:$0xff] %vm378_vm1, %v3061_v1  ;;  %v443_v3 = vor.u32 %v441_v58, %v439_v57  ;;  %v435_v6 = vor.u32 %v433_v63, %v431_v60  ;;  %v729_v14 = vrot.slane %v2976_v4, 1  ;;  %v731_v20 = vrot.slane %v3017_v41, 1 }
  0x22   : > { %1361 = vrot.lane.b32.xlu1 %v1314_v46, %s2913_s24  ;;  %603 = vrot.lane.b32.xlu0 %v424_v49, %s2915_s26  ;;  %386 = vst.msk [vmem:[#allocation2 + $0x38] sm:$0xff] %vm378_vm1, %v3065_v2  ;;  %v427_v17 = vor.u32 %v425_v7, %v3011_v34  ;;  %v3098_v22 = vcombine.low %v3095_v21, %v261_v11  ;;  %v733_v26 = vrot.slane %v3021_v42, 1  ;;  %v3128_v34 = vld [vmem:[%s2970_s22 + $0x58] sm:$0xf]  ;;  %v1036_v40 = vshrl.u32 %v2980_v8, 16 }
  0x23   : > { %v3089_v15 = vsel %vm404_vm2, %v443_v3, %v3073_v5  ;;  %v440_v16 = vsel %vm404_vm2, %v435_v6, %v439_v57  ;;  %v3100_v23 = vcombine.low %v262_v12, %v263_v13  ;;  %v732_v24 = vsel %vm723_vm0, %v729_v14, %v731_v20  ;;  %v3171_v49 = vld [vmem:[%s2970_s22 + $0x68] sm:$0xf]  ;;  %v272_v6 = vld [vmem:[%s2970_s22 + $0x70] sm:$0xf]  ;;  %v273_v7 = vld [vmem:[%s2970_s22 + $0x74] sm:$0xf] }
  0x24   : > { %387 = vst.msk [vmem:[#allocation2 + $0x40] sm:$0xff] %vm378_vm1, %v3098_v22  ;;  %v3114_v27 = vcombine.low %v2996_v25, %v3002_v29  ;;  %v3123_v32 = vcombine.low %v3005_v30, %v256_v53  ;;  %v3125_v33 = vcombine.low %v261_v11, %v262_v12  ;;  %v3136_v25 = vsel %vm723_vm0, %v731_v20, %v733_v26  ;;  %v3145_v30 = vld [vmem:[%s2970_s22 + $0x60] sm:$0xf]  ;;  %v274_v20 = vld [vmem:[%s2970_s22 + $0x78] sm:$0xf] }
  0x25   : > { %388 = vst.msk [vmem:[#allocation2 + $0x48] sm:$0xff] %vm378_vm1, %v3100_v23  ;;  %v730_v29 = vsel %vm723_vm0, %v727_v18, %v729_v14  ;;  %v3142_v37 = vcombine.low %v263_v13, %v264_v28  ;;  %v3158_v45 = vcombine.low %v264_v28, %v3118_v31  ;;  %v3168_v48 = vcombine.low %v3128_v34, %v3131_v35 }
  0x26   : > { %1214 = vrot.lane.b32.xlu1 %v1035_v61, %s2916_s29  ;;  %1212 = vrot.lane.b32.xlu0 %v1027_v62, %s2916_s29  ;;  %v1040_v36 = vshll.u32 %v3114_v27, 16  ;;  %v1044_v39 = vshrl.u32 %v3114_v27, 16  ;;  %v1076_v43 = vshrl.u32 %v3125_v33, 16  ;;  %v1323_v18 = vrot.slane %v3125_v33, 1 }
  0x27   : > { %v1080_v9 = vshll.u32 %v3142_v37, 16  ;;  %v1325_v44 = vrot.slane %v3142_v37, 1  ;;  %v1048_v46 = vshll.u32 %v3123_v32, 16  ;;  %v3175_v50 = vcombine.low %v3145_v30, %v3148_v38  ;;  %389 = vst.msk [vmem:[#allocation2 + $0x50] sm:$0xff] %vm378_vm1, %v3158_v45  ;;  %390 = vst.msk [vmem:[#allocation2 + $0x58] sm:$0xff] %vm378_vm1, %v3168_v48 }
  0x28   : > { %v1042_v52 = vrot.slane %v1040_v36, 1  ;;  %v453_v53 = vshll.u32 %v3061_v1, 16  ;;  %v1038_v61 = vor.u32 %v1036_v40, %v3037_v51  ;;  %v457_v62 = vshrl.u32 %v3061_v1, 16 }
  0x29   : > { %v3178_v57 = vrot.slane %v1080_v9, 1  ;;  %v3185_v58 = vsel %vm723_vm0, %v1323_v18, %v1325_v44  ;;  %391 = vst.msk [vmem:[#allocation2 + $0x60] sm:$0xff] %vm378_vm1, %v3175_v50  ;;  %v449_v63 = vshrl.u32 %v3021_v42, 16  ;;  %v3205_v3 = vcombine.low %v3171_v49, %v271_v59 }
  0x2a   : > { %1464 = vrot.lane.b32.xlu1 %v3017_v41, %s2917_s6  ;;  %1462 = vrot.lane.b32.xlu0 %v2976_v4, %s2917_s6  ;;  %v432_v4 = vsel %vm404_vm2, %v427_v17, %v431_v60  ;;  %v1072_v41 = vshll.u32 %v3125_v33, 16  ;;  %v1046_v51 = vor.u32 %v1044_v39, %v1042_v52  ;;  %v3209_v10 = vrot.slane %v1048_v46, 1  ;;  %v276_v39 = vld [vmem:[%s2970_s22 + $0x80] sm:$0xf] }
  0x2b   : > { %v455_v11 = vrot.slane %v453_v53, 1  ;;  %v461_v12 = vshll.u32 %v3065_v2, 16  ;;  %392 = vst.msk [vmem:[#allocation2 + $0x68] sm:$0xff] %vm378_vm1, %v3205_v3  ;;  %v1315_v13 = vrot.slane %v3114_v27, 1  ;;  %v1317_v14 = vrot.slane %v3123_v32, 1 }
  0x2c   : > { %v3164_v47 = vrot.slane %v1072_v41, 1  ;;  %v451_v17 = vor.u32 %v449_v63, %v3073_v5  ;;  %v1043_v28 = vsel %vm404_vm2, %v1038_v61, %v1042_v52  ;;  %v3242_v41 = vcombine.low %v271_v59, %v272_v6 }
  0x2d   : > { %v3228_v36 = vrot.slane %v461_v12, 1  ;;  %v1318_v5 = vsel %vm723_vm0, %v1315_v13, %v1317_v14  ;;  %v1316_v40 = vsel %vm723_vm0, %v1313_v19, %v1315_v13  ;;  %v735_v9 = vrot.slane %v3061_v1, 1 }
  0x2e   : > { %1591 = vrot.lane.b32.xlu1 %v3089_v15, %s2918_s7  ;;  %1589 = vrot.lane.b32.xlu0 %v440_v16, %s2918_s7  ;;  %v1078_v60 = vor.u32 %v1076_v43, %v3164_v47  ;;  %v3249_v46 = vcombine.low %v273_v7, %v274_v20  ;;  %v456_v19 = vsel %vm404_vm2, %v451_v17, %v455_v11  ;;  %v1116_v61 = vshrl.u32 %v3242_v41, 16 }
  0x2f   : > { %v3262_v53 = vcombine.low %v3118_v31, %v3128_v34  ;;  %v1084_v63 = vshrl.u32 %v3142_v37, 16  ;;  %v3273_v34 = vcombine.low %v3131_v35, %v3145_v30 }
  0x30   : > { %v3202_v0 = vsel %vm404_vm2, %v1078_v60, %v3178_v57  ;;  %v1112_v60 = vshll.u32 %v3242_v41, 16 }
  0x31   : > { %v1086_v12 = vor.u32 %v1084_v63, %v3178_v57  ;;  %v1092_v13 = vshrl.u32 %v3262_v53, 16  ;;  %v1329_v63 = vrot.slane %v3273_v34, 1 }
  0x32   : > { %605 = vrot.lane.b32.xlu1 %v432_v4, %s2915_s26  ;;  %1695 = vrot.lane.b32.xlu0 %v732_v24, %s2919_s8  ;;  %v275_v4 = vld [vmem:[%s2970_s22 + $0x7c] sm:$0xf] }
  0x33   : > { %v3244_v43 = vcombine.low %v274_v20, %v275_v4  ;;  %v3251_v52 = vcombine.low %v275_v4, %v276_v39  ;;  %v1096_v4 = vshll.u32 %v3273_v34, 16 }
  0x35   : > { %394 = vst.msk [vmem:[#allocation2 + $0x78] sm:$0xff] %vm378_vm1, %v3244_v43  ;;  %v1128_v31 = vshll.u32 %v3251_v52, 16 }
  0x36   : > { %607 = vrot.lane.b32.xlu1 %v440_v16, %s2915_s26  ;;  %1697 = vrot.lane.b32.xlu0 %v3136_v25, %s2919_s8  ;;  %v3216_v16 = vcombine.low %v272_v6, %v273_v7  ;;  %v1088_v6 = vshll.u32 %v3262_v53, 16  ;;  %v1124_v7 = vshrl.u32 %v3249_v46, 16 }
  0x37   : > { %v3281_v20 = vrot.slane %v1128_v31, 1 }
  0x38   : > { %393 = vst.msk [vmem:[#allocation2 + $0x70] sm:$0xff] %vm378_vm1, %v3216_v16  ;;  %v1090_v17 = vrot.slane %v1088_v6, 1  ;;  %v278_v6 = vld [vmem:[%s2970_s22 + $0x88] sm:$0xf] }
  0x3a   : > { %779 = vrot.lane.b32.xlu1 %v732_v24, %s2914_s25  ;;  %777 = vrot.lane.b32.xlu0 %v730_v29, %s2914_s25  ;;  %v1051_v24 = vsel %vm404_vm2, %v1046_v51, %v3209_v10  ;;  %v459_v29 = vor.u32 %v457_v62, %v455_v11  ;;  %v1120_v62 = vshll.u32 %v3249_v46, 16  ;;  %v3277_v51 = vrot.slane %v1112_v60, 1 }
  0x3b   : > { %v3290_v57 = vsel %vm404_vm2, %v1086_v12, %v1090_v17 }
  0x3c   : > { %v1122_v11 = vrot.slane %v1120_v62, 1  ;;  %v1118_v35 = vor.u32 %v1116_v61, %v3277_v51 }
  0x3e   : > { %924 = vrot.lane.b32.xlu1 %v3114_v27, %s2912_s23  ;;  %922 = vrot.lane.b32.xlu0 %v2980_v8, %s2912_s23  ;;  %v2880_v27 = vld [vmem:[%s4498_s1 + $0x10] ss:$0 sps:$4 sm:$0x33]   ;;  %v3255_v8 = vsel %vm404_vm2, %v459_v29, %v3228_v36  ;;  %v1126_v30 = vor.u32 %v1124_v7, %v1122_v11  ;;  %v1327_v29 = vrot.slane %v3262_v53, 1  ;;  %v3300_v60 = vsel %vm404_vm2, %v1118_v35, %v1122_v11  ;;  %v3314_v7 = vld [vmem:[%s2970_s22 + $0x8c] sm:$0xf] }
  0x3f   : > { %2815 = vmatprep.subr.msk.bf16.mxu0 %vm1916_vm3, %v2880_v27  ;;  %v1918_v59 = vsel %vm1916_vm3, %v2880_v27, 0  ;;  %2816 = vmatprep.subr.msk.bf16.mxu1 %vm1916_vm3, %v2880_v27  ;;  %v277_v27 = vld [vmem:[%s2970_s22 + $0x84] sm:$0xf]  ;;  %v2674_v35 = vcombine.low %v3041_v54, %v3044_v55 }
  0x40   : > { %2760 = vmatpush3.bf16.msra.mxu0 %v1918_v59  ;;  %2814 = vmatpush3.bf16.msra.mxu1 %v1918_v59  ;;  %v1337_v59 = vrot.slane %v3251_v52, 1  ;;  %v3304_v61 = vsel %vm404_vm2, %v1126_v30, %v3281_v20  ;;  %v3323_v11 = vsel %vm723_vm0, %v1325_v44, %v1327_v29  ;;  %v736_v44 = vsel %vm723_vm0, %v733_v26, %v735_v9 }
  0x41   : > { %v3367_v26 = vcombine.low %v3047_v56, %v3095_v21  ;;  %v1056_v54 = vshll.u32 %v2674_v35, 16 }
  0x42   : > { %1218 = vrot.lane.b32.xlu1 %v1051_v24, %s2916_s29  ;;  %1216 = vrot.lane.b32.xlu0 %v1043_v28, %s2916_s29  ;;  %v1333_v24 = vrot.slane %v3242_v41, 1  ;;  %v1335_v28 = vrot.slane %v3249_v46, 1 }
  0x43   : > { %v1058_v55 = vrot.slane %v1056_v54, 1  ;;  %v1064_v30 = vshll.u32 %v3367_v26, 16  ;;  %v477_v54 = vshll.u32 %v3100_v23, 16 }
  0x44   : > { %v3309_v62 = vsel %vm723_vm0, %v1333_v24, %v1335_v28  ;;  %v3328_v12 = vsel %vm723_vm0, %v1335_v28, %v1337_v59  ;;  %v1052_v28 = vshrl.u32 %v3123_v32, 16 }
  0x45   : > { %v3377_v56 = vrot.slane %v1064_v30, 1 }
  0x46   : > { %1365 = vrot.lane.b32.xlu1 %v1318_v5, %s2913_s24  ;;  %1363 = vrot.lane.b32.xlu0 %v1316_v40, %s2913_s24  ;;  %v1094_v5 = vor.u32 %v1092_v13, %v1090_v17  ;;  %v3292_v40 = vrot.slane %v1096_v4, 1  ;;  %v3330_v13 = vcombine.low %v276_v39, %v277_v27  ;;  %v3335_v17 = vsel %vm723_vm0, %v1327_v29, %v1329_v63 }
  0x47   : > { %v3340_v4 = vcombine.low %v278_v6, %v3314_v7  ;;  %v737_v39 = vrot.slane %v3065_v2, 1  ;;  %v1054_v21 = vor.u32 %v1052_v28, %v3209_v10  ;;  %v3401_v28 = vrot.slane %v477_v54, 1 }
  0x48   : > { %v3318_v31 = vsel %vm404_vm2, %v1094_v5, %v3292_v40  ;;  %395 = vst.msk [vmem:[#allocation2 + $0x80] sm:$0xff] %vm378_vm1, %v3330_v13  ;;  %v1319_v5 = vrot.slane %v2674_v35, 1 }
  0x49   : > { %396 = vst.msk [vmem:[#allocation2 + $0x88] sm:$0xff] %vm378_vm1, %v3340_v4  ;;  %v1059_v29 = vsel %vm404_vm2, %v1054_v21, %v1058_v55  ;;  %v3404_v21 = vcombine.low %v277_v27, %v278_v6  ;;  %v280_v27 = vld [vmem:[%s2970_s22 + $0x90] sm:$0xf] }
  0x4a   : > { %1468 = vrot.lane.b32.xlu1 %v3061_v1, %s2917_s6  ;;  %1466 = vrot.lane.b32.xlu0 %v3021_v42, %s2917_s6  ;;  %v3363_v42 = vsel %vm723_vm0, %v735_v9, %v737_v39  ;;  %v469_v9 = vshll.u32 %v3098_v22, 16 }
  0x4c   : > { %v471_v10 = vrot.slane %v469_v9, 1  ;;  %v3408_v9 = vcombine.low %v3148_v38, %v3171_v49  ;;  %v739_v49 = vrot.slane %v3098_v22, 1 }
  0x4e   : > { %1595 = vrot.lane.b32.xlu1 %v3255_v8, %s2918_s7  ;;  %1593 = vrot.lane.b32.xlu0 %v456_v19, %s2918_s7 }
  0x52   : > { %609 = vrot.lane.b32.xlu1 %v3089_v15, %s2915_s26  ;;  %1699 = vrot.lane.b32.xlu0 %v736_v44, %s2919_s8  ;;  %v1060_v15 = vshrl.u32 %v2674_v35, 16 }
  0x54   : > { %v1062_v1 = vor.u32 %v1060_v15, %v1058_v55  ;;  %v465_v15 = vshrl.u32 %v3065_v2, 16 }
  0x56   : > { %611 = vrot.lane.b32.xlu1 %v456_v19, %s2915_s26  ;;  %1701 = vrot.lane.b32.xlu0 %v3363_v42, %s2919_s8  ;;  %v1067_v19 = vsel %vm404_vm2, %v1062_v1, %v3377_v56  ;;  %v467_v1 = vor.u32 %v465_v15, %v3228_v36  ;;  %v3428_v15 = vcombine.low %v3314_v7, %v280_v27  ;;  %v741_v7 = vrot.slane %v3100_v23, 1 }
  0x58   : > { %v472_v38 = vsel %vm404_vm2, %v467_v1, %v471_v10 }
  0x5a   : > { %783 = vrot.lane.b32.xlu1 %v736_v44, %s2914_s25  ;;  %781 = vrot.lane.b32.xlu0 %v3136_v25, %s2914_s25  ;;  %v1321_v25 = vrot.slane %v3367_v26, 1  ;;  %v473_v44 = vshrl.u32 %v3098_v22, 16 }
  0x5c   : > { %v1322_v30 = vsel %vm723_vm0, %v1319_v5, %v1321_v25  ;;  %v475_v55 = vor.u32 %v473_v44, %v471_v10  ;;  %v1140_v10 = vshrl.u32 %v3404_v21, 16 }
  0x5e   : > { %928 = vrot.lane.b32.xlu1 %v2674_v35, %s2912_s23  ;;  %926 = vrot.lane.b32.xlu0 %v3123_v32, %s2912_s23  ;;  %v1320_v35 = vsel %vm723_vm0, %v1317_v14, %v1319_v5  ;;  %v1132_v32 = vshrl.u32 %v3251_v52, 16  ;;  %v1136_v14 = vshll.u32 %v3404_v21, 16  ;;  %v3420_v36 = vsel %vm404_vm2, %v475_v55, %v3401_v28 }
  0x60   : > { %v1134_v6 = vor.u32 %v1132_v32, %v3281_v20  ;;  %v1138_v5 = vrot.slane %v1136_v14, 1  ;;  %v1144_v20 = vshll.u32 %v3428_v15, 16 }
  0x62   : > { %1222 = vrot.lane.b32.xlu1 %v1067_v19, %s2916_s29  ;;  %1220 = vrot.lane.b32.xlu0 %v1059_v29, %s2916_s29  ;;  %v1100_v19 = vshrl.u32 %v3273_v34, 16  ;;  %v1104_v29 = vshll.u32 %v3408_v9, 16  ;;  %v1142_v55 = vor.u32 %v1140_v10, %v1138_v5  ;;  %v3446_v32 = vrot.slane %v1144_v20, 1 }
  0x63   : > { %v493_v20 = vshll.u32 %v3168_v48, 16 }
  0x64   : > { %v1102_v44 = vor.u32 %v1100_v19, %v3292_v40  ;;  %v1106_v54 = vrot.slane %v1104_v29, 1  ;;  %v740_v40 = vsel %vm723_vm0, %v737_v39, %v739_v49  ;;  %v3462_v39 = vsel %vm723_vm0, %v739_v49, %v741_v7 }
  0x65   : > { %v1339_v19 = vrot.slane %v3404_v21, 1  ;;  %v1068_v49 = vshrl.u32 %v3367_v26, 16 }
  0x66   : > { %1369 = vrot.lane.b32.xlu1 %v1322_v30, %s2913_s24  ;;  %1367 = vrot.lane.b32.xlu0 %v1320_v35, %s2913_s24  ;;  %v3431_v30 = vsel %vm404_vm2, %v1134_v6, %v1138_v5  ;;  %v3434_v35 = vsel %vm404_vm2, %v1102_v44, %v1106_v54  ;;  %v1341_v6 = vrot.slane %v3428_v15, 1  ;;  %v485_v44 = vshll.u32 %v3158_v45, 16 }
  0x68   : > { %v3484_v5 = vsel %vm723_vm0, %v1339_v19, %v1341_v6  ;;  %v487_v10 = vrot.slane %v485_v44, 1  ;;  %v4503_v44 = vrot.slane %v3168_v48, 1 }
  0x6a   : > { %1472 = vrot.lane.b32.xlu1 %v3098_v22, %s2917_s6  ;;  %1470 = vrot.lane.b32.xlu0 %v3065_v2, %s2917_s6  ;;  %v1108_v22 = vshrl.u32 %v3408_v9, 16  ;;  %v3457_v2 = vsel %vm404_vm2, %v1142_v55, %v3446_v32 }
  0x6c   : > { %v1110_v1 = vor.u32 %v1108_v22, %v1106_v54  ;;  %v489_v22 = vshrl.u32 %v3158_v45, 16 }
  0x6e   : > { %1599 = vrot.lane.b32.xlu1 %v3420_v36, %s2918_s7  ;;  %1597 = vrot.lane.b32.xlu0 %v472_v38, %s2918_s7  ;;  %v3450_v14 = vsel %vm404_vm2, %v1110_v1, %v3277_v51  ;;  %v1331_v51 = vrot.slane %v3408_v9, 1 }
  0x70   : > { %v3474_v29 = vsel %vm723_vm0, %v1329_v63, %v1331_v51  ;;  %v1070_v63 = vor.u32 %v1068_v49, %v3377_v56  ;;  %v3520_v56 = vld [vmem:[%s2970_s22 + $0x98] sm:$0xf]  ;;  %v509_v49 = vshll.u32 %v3205_v3, 16 }
  0x72   : > { %613 = vrot.lane.b32.xlu1 %v3255_v8, %s2915_s26  ;;  %1703 = vrot.lane.b32.xlu0 %v740_v40, %s2919_s8  ;;  %v3469_v8 = vsel %vm723_vm0, %v1337_v59, %v1339_v19  ;;  %v3489_v59 = vsel %vm723_vm0, %v1331_v51, %v1333_v24  ;;  %v1075_v24 = vsel %vm404_vm2, %v1070_v63, %v3164_v47  ;;  %v481_v47 = vshrl.u32 %v3100_v23, 16 }
  0x73   : > { %v505_v51 = vshrl.u32 %v3175_v50, 16 }
  0x76   : > { %615 = vrot.lane.b32.xlu1 %v472_v38, %s2915_s26  ;;  %1705 = vrot.lane.b32.xlu0 %v3462_v39, %s2919_s8  ;;  %v3500_v38 = vld [vmem:[%s2970_s22 + $0x94] sm:$0xf] }
  0x77   : > { %v3506_v54 = vcombine.low %v280_v27, %v3500_v38  ;;  %v3523_v27 = vld [vmem:[%s2970_s22 + $0x9c] sm:$0xf] }
  0x79   : > { %397 = vst.msk [vmem:[#allocation2 + $0x90] sm:$0xff] %vm378_vm1, %v3506_v54 }
  0x7a   : > { %787 = vrot.lane.b32.xlu1 %v740_v40, %s2914_s25  ;;  %785 = vrot.lane.b32.xlu0 %v3363_v42, %s2914_s25  ;;  %v1324_v42 = vsel %vm723_vm0, %v1321_v25, %v1323_v18  ;;  %v3537_v25 = vrot.slane %v493_v20, 1  ;;  %v501_v40 = vshll.u32 %v3175_v50, 16 }
  0x7c   : > { %v3550_v19 = vrot.slane %v501_v40, 1 }
  0x7e   : > { %932 = vrot.lane.b32.xlu1 %v3125_v33, %s2912_s23  ;;  %930 = vrot.lane.b32.xlu0 %v3367_v26, %s2912_s23  ;;  %v483_v33 = vor.u32 %v481_v47, %v3401_v28  ;;  %v491_v26 = vor.u32 %v489_v22, %v487_v10  ;;  %v511_v47 = vrot.slane %v509_v49, 1  ;;  %v517_v22 = vshll.u32 %v3216_v16, 16 }
  0x80   : > { %v488_v1 = vsel %vm404_vm2, %v483_v33, %v487_v10  ;;  %v3548_v28 = vsel %vm404_vm2, %v491_v26, %v3537_v25  ;;  %v513_v10 = vshrl.u32 %v3205_v3, 16  ;;  %v3581_v40 = vrot.slane %v517_v22, 1  ;;  %v284_v22 = vld [vmem:[%s2970_s22 + $0xa0] sm:$0xf] }
  0x82   : > { %1226 = vrot.lane.b32.xlu1 %v3202_v0, %s2916_s29  ;;  %1224 = vrot.lane.b32.xlu0 %v1075_v24, %s2916_s29  ;;  %v3529_v0 = vcombine.low %v3520_v56, %v3523_v27  ;;  %v515_v26 = vor.u32 %v513_v10, %v511_v47  ;;  %v4502_v10 = vrot.slane %v3216_v16, 1 }
  0x84   : > { %398 = vst.msk [vmem:[#allocation2 + $0x98] sm:$0xff] %vm378_vm1, %v3529_v0 }
  0x86   : > { %1373 = vrot.lane.b32.xlu1 %v3185_v58, %s2913_s24  ;;  %1371 = vrot.lane.b32.xlu0 %v1324_v42, %s2913_s24  ;;  %v743_v58 = vrot.slane %v3158_v45, 1  ;;  %v507_v42 = vor.u32 %v505_v51, %v3550_v19 }
  0x87   : > { %v921_v18 = vpop.permute.xlu1 %920 }
  0x88   : > { %v919_v55 = vpop.permute.xlu0 %918 }
  0x8a   : > { %1476 = vrot.lane.b32.xlu1 %v3158_v45, %s2917_s6  ;;  %1474 = vrot.lane.b32.xlu0 %v3100_v23, %s2917_s6  ;;  %v3560_v45 = vsel %vm723_vm0, %v741_v7, %v743_v58  ;;  %v3575_v23 = vsel %vm723_vm0, %v743_v58, %v4503_v44  ;;  %v3578_v7 = vsel %vm404_vm2, %v507_v42, %v511_v47  ;;  %v749_v58 = vrot.slane %v3205_v3, 1 }
  0x8c   : > { %v1360_v63 = vpop.permute.xlu0 %1359  ;;  %v774_v24 = vpop.permute.xlu1 %773 }
  0x8e   : > { %1603 = vrot.lane.b32.xlu1 %v3548_v28, %s2918_s7  ;;  %1601 = vrot.lane.b32.xlu0 %v488_v1, %s2918_s7 }
  0x90   : > { %v776_v20 = vpop.permute.xlu1 %775  ;;  %v602_v33 = vpop.permute.xlu0 %601 }
  0x91   : > { %674 = vst.msk [vmem:[#allocation2] sm:$0xff] %vm673_vm4, %v602_v33 }
  0x92   : > { %846 = vst.msk [vmem:[#allocation2] sm:$0xff] %vm845_vm5, %v774_v24  ;;  %617 = vrot.lane.b32.xlu1 %v3420_v36, %s2915_s26  ;;  %1707 = vrot.lane.b32.xlu0 %v3560_v45, %s2919_s8  ;;  %v3592_v36 = vsel %vm404_vm2, %v515_v26, %v3581_v40  ;;  %v3616_v26 = vcombine.low %v3523_v27, %v284_v22 }
  0x93   : > { %991 = vst.msk [vmem:[#allocation2] sm:$0xff] %vm990_vm6, %v919_v55  ;;  %v747_v55 = vrot.slane %v3175_v50, 1  ;;  %v3630_v27 = vsel %vm723_vm0, %v749_v58, %v4502_v10 }
  0x94   : > { %v1362_v51 = vpop.permute.xlu1 %1361  ;;  %v604_v49 = vpop.permute.xlu0 %603 }
  0x95   : > { %675 = vst.msk [vmem:[#allocation2 + $0x8] sm:$0xff] %vm673_vm4, %v604_v49  ;;  %v3610_v47 = vsel %vm723_vm0, %v747_v55, %v749_v58 }
  0x96   : > { %847 = vst.msk [vmem:[#allocation2 + $0x8] sm:$0xff] %vm845_vm5, %v776_v20  ;;  %1709 = vrot.lane.b32.xlu1 %v3575_v23, %s2919_s8  ;;  %625 = vrot.lane.b32.xlu0 %v3578_v7, %s2915_s26 }
  0x97   : > { %992 = vst.msk [vmem:[#allocation2 + $0x8] sm:$0xff] %vm990_vm6, %v921_v18  ;;  %v3605_v18 = vcombine.low %v3500_v38, %v3520_v56  ;;  %v1148_v38 = vshrl.u32 %v3428_v15, 16 }
  0x98   : > { %v1215_v24 = vpop.permute.xlu1 %1214  ;;  %v1213_v42 = vpop.permute.xlu0 %1212 }
  0x99   : > { %1286 = vst.msk [vmem:[#allocation2 + $0x8] sm:$0xff] %vm1284_vm7, %v1215_v24  ;;  %1285 = vst.msk [vmem:[#allocation2] sm:$0xff] %vm1284_vm7, %v1213_v42  ;;  %v1150_v49 = vor.u32 %v1148_v38, %v3446_v32  ;;  %v1343_v58 = vrot.slane %v3605_v18, 1 }
  0x9a   : > { %627 = vrot.lane.b32.xlu1 %v3592_v36, %s2915_s26  ;;  %619 = vrot.lane.b32.xlu0 %v488_v1, %s2915_s26  ;;  %1433 = vst.msk [vmem:[#allocation2 + $0x8] sm:$0xff] %vm1431_vm8, %v1362_v51  ;;  %1432 = vst.msk [vmem:[#allocation2] sm:$0xff] %vm1431_vm8, %v1360_v63  ;;  %v1152_v1 = vshll.u32 %v3605_v18, 16  ;;  %v1156_v63 = vshrl.u32 %v3605_v18, 16  ;;  %v1160_v51 = vshll.u32 %v3616_v26, 16 }
  0x9c   : > { %v1465_v20 = vpop.permute.xlu1 %1464  ;;  %v1463_v33 = vpop.permute.xlu0 %1462  ;;  %v1154_v56 = vrot.slane %v1152_v1, 1 }
  0x9d   : > { %1536 = vst.msk [vmem:[#allocation2 + $0x8] sm:$0xff] %vm1534_vm9, %v1465_v20  ;;  %1535 = vst.msk [vmem:[#allocation2] sm:$0xff] %vm1534_vm9, %v1463_v33  ;;  %v3633_v33 = vrot.slane %v1160_v51, 1 }
  0x9e   : > { %797 = vrot.lane.b32.xlu1 %v3610_v47, %s2914_s25  ;;  %789 = vrot.lane.b32.xlu0 %v3462_v39, %s2914_s25  ;;  %v1158_v20 = vor.u32 %v1156_v63, %v1154_v56  ;;  %v3638_v39 = vsel %vm404_vm2, %v1150_v49, %v1154_v56  ;;  %v1345_v56 = vrot.slane %v3616_v26, 1  ;;  %v285_v63 = vld [vmem:[%s2970_s22 + $0xa4] sm:$0xf] }
  0x9f   : > { %v3667_v49 = vcombine.low %v284_v22, %v285_v63 }
  0xa0   : > { %v1592_v24 = vpop.permute.xlu1 %1591  ;;  %v1590_v42 = vpop.permute.xlu0 %1589  ;;  %v3646_v32 = vsel %vm404_vm2, %v1158_v20, %v3633_v33  ;;  %v3665_v51 = vsel %vm723_vm0, %v1343_v58, %v1345_v56 }
  0xa1   : > { %1663 = vst.msk [vmem:[#allocation2 + $0x8] sm:$0xff] %vm1661_vm10, %v1592_v24  ;;  %1662 = vst.msk [vmem:[#allocation2] sm:$0xff] %vm1661_vm10, %v1590_v42  ;;  %v286_v24 = vld [vmem:[%s2970_s22 + $0xa8] sm:$0xf]  ;;  %v287_v42 = vld [vmem:[%s2970_s22 + $0xac] sm:$0xf] }
  0xa2   : > { %799 = vrot.lane.b32.xlu1 %v3630_v27, %s2914_s25  ;;  %791 = vrot.lane.b32.xlu0 %v3560_v45, %s2914_s25  ;;  %v3655_v45 = vsel %vm723_vm0, %v1341_v6, %v1343_v58  ;;  %399 = vst.msk [vmem:[#allocation2 + $0xa0] sm:$0xff] %vm378_vm1, %v3667_v49  ;;  %v3673_v6 = vcombine.low %v286_v24, %v287_v42 }
  0xa4   : > { %v606_v1 = vpop.permute.xlu1 %605  ;;  %v1696_v38 = vpop.permute.xlu0 %1695  ;;  %400 = vst.msk [vmem:[#allocation2 + $0xa8] sm:$0xff] %vm378_vm1, %v3673_v6 }
  0xa5   : > { %676 = vst.msk [vmem:[#allocation2 + $0x10] sm:$0xff] %vm673_vm4, %v606_v1 }
  0xa6   : > { %1768 = vst.msk [vmem:[#allocation2] sm:$0xff] %vm1767_vm11, %v1696_v38  ;;  %942 = vrot.lane.b32.xlu1 %v3242_v41, %s2912_s23  ;;  %934 = vrot.lane.b32.xlu0 %v3142_v37, %s2912_s23 }
  0xa8   : > { %v608_v20 = vpop.permute.xlu1 %607  ;;  %v1698_v1 = vpop.permute.xlu0 %1697 }
  0xa9   : > { %677 = vst.msk [vmem:[#allocation2 + $0x18] sm:$0xff] %vm673_vm4, %v608_v20 }
  0xaa   : > { %1769 = vst.msk [vmem:[#allocation2 + $0x8] sm:$0xff] %vm1767_vm11, %v1698_v1  ;;  %944 = vrot.lane.b32.xlu1 %v3249_v46, %s2912_s23  ;;  %936 = vrot.lane.b32.xlu0 %v3262_v53, %s2912_s23 }
  0xac   : > { %v780_v37 = vpop.permute.xlu1 %779  ;;  %v778_v41 = vpop.permute.xlu0 %777 }
  0xad   : > { %v1792_v22 = vld [vmem:[#allocation2] sm:$0xff]  ;;  %849 = vst.msk [vmem:[#allocation2 + $0x18] sm:$0xff] %vm845_vm5, %v780_v37  ;;  %848 = vst.msk [vmem:[#allocation2 + $0x10] sm:$0xff] %vm845_vm5, %v778_v41  ;;  %v533_v37 = vshll.u32 %v3330_v13, 16  ;;  %v288_v41 = vld [vmem:[%s2970_s22 + $0xb0] sm:$0xf] }
  0xae   : > { %2761 = vmatprep.mubr.msk.bf16.mxu0 %vm1843_vm12, %v1792_v22  ;;  %1236 = vrot.lane.b32.xlu1 %v3300_v60, %s2916_s29 }
  0xaf   : > { %1228 = vrot.lane.b32.xlu0 %v3290_v57, %s2916_s29  ;;  %v525_v57 = vshll.u32 %v3244_v43, 16 }
  0xb0   : > { %v925_v46 = vpop.permute.xlu1 %924  ;;  %v923_v53 = vpop.permute.xlu0 %922 }
  0xb1   : > { %v1793_v58 = vld [vmem:[#allocation2 + $0x8] sm:$0xff]  ;;  %994 = vst.msk [vmem:[#allocation2 + $0x18] sm:$0xff] %vm990_vm6, %v925_v46  ;;  %993 = vst.msk [vmem:[#allocation2 + $0x10] sm:$0xff] %vm990_vm6, %v923_v53  ;;  %v3713_v1 = vrot.slane %v525_v57, 1  ;;  %v535_v57 = vrot.slane %v533_v37, 1 }
  0xb2   : > { %2762 = vmatmul.mubr.msk.bf16.vlgmr.msra.gmra.mrb[0].mxu0 %vm1843_vm12, %v1793_v58  ;;  %1238 = vrot.lane.b32.xlu1 %v3304_v61, %s2916_s29  ;;  %v3719_v58 = vcombine.low %v287_v42, %v288_v41 }
  0xb3   : > { %1230 = vrot.lane.b32.xlu0 %v3318_v31, %s2916_s29  ;;  %v497_v31 = vshrl.u32 %v3168_v48, 16 }
  0xb4   : > { %v1219_v38 = vpop.permute.xlu1 %1218  ;;  %v1217_v60 = vpop.permute.xlu0 %1216 }
  0xb5   : > { %1288 = vst.msk [vmem:[#allocation2 + $0x18] sm:$0xff] %vm1284_vm7, %v1219_v38  ;;  %1287 = vst.msk [vmem:[#allocation2 + $0x10] sm:$0xff] %vm1284_vm7, %v1217_v60  ;;  %v1176_v38 = vshll.u32 %v3719_v58, 16 }
  0xb6   : > { %1383 = vrot.lane.b32.xlu1 %v3309_v62, %s2913_s24  ;;  %v3711_v62 = vcombine.low %v285_v63, %v286_v24  ;;  %v499_v63 = vor.u32 %v497_v31, %v3537_v25 }
  0xb7   : > { %1375 = vrot.lane.b32.xlu0 %v3323_v11, %s2913_s24  ;;  %v529_v11 = vshrl.u32 %v3244_v43, 16  ;;  %v3735_v44 = vrot.slane %v1176_v38, 1  ;;  %v1349_v38 = vrot.slane %v3719_v58, 1 }
  0xb8   : > { %v1366_v20 = vpop.permute.xlu1 %1365  ;;  %v1364_v61 = vpop.permute.xlu0 %1363  ;;  %v1168_v53 = vshll.u32 %v3711_v62, 16  ;;  %v1172_v42 = vshrl.u32 %v3711_v62, 16 }
  0xb9   : > { %1435 = vst.msk [vmem:[#allocation2 + $0x18] sm:$0xff] %vm1431_vm8, %v1366_v20  ;;  %1434 = vst.msk [vmem:[#allocation2 + $0x10] sm:$0xff] %vm1431_vm8, %v1364_v61  ;;  %v531_v60 = vor.u32 %v529_v11, %v3713_v1  ;;  %v541_v20 = vshll.u32 %v3340_v4, 16 }
  0xba   : > { %1385 = vrot.lane.b32.xlu1 %v3328_v12, %s2913_s24  ;;  %v537_v12 = vshrl.u32 %v3330_v13, 16  ;;  %v1170_v24 = vrot.slane %v1168_v53, 1 }
  0xbb   : > { %1377 = vrot.lane.b32.xlu0 %v3335_v17, %s2913_s24  ;;  %v1164_v17 = vshrl.u32 %v3616_v26, 16  ;;  %v536_v11 = vsel %vm404_vm2, %v531_v60, %v535_v57  ;;  %v3755_v53 = vrot.slane %v541_v20, 1  ;;  %v521_v20 = vshrl.u32 %v3216_v16, 16 }
  0xbc   : > { %v1469_v22 = vpop.permute.xlu1 %1468  ;;  %v1467_v46 = vpop.permute.xlu0 %1466  ;;  %v1174_v10 = vor.u32 %v1172_v42, %v1170_v24  ;;  %v539_v37 = vor.u32 %v537_v12, %v535_v57  ;;  %v753_v12 = vrot.slane %v3244_v43, 1 }
  0xbd   : > { %1538 = vst.msk [vmem:[#allocation2 + $0x18] sm:$0xff] %vm1534_vm9, %v1469_v22  ;;  %1537 = vst.msk [vmem:[#allocation2 + $0x10] sm:$0xff] %vm1534_vm9, %v1467_v46  ;;  %v1166_v61 = vor.u32 %v1164_v17, %v3633_v33  ;;  %v3748_v33 = vsel %vm404_vm2, %v499_v63, %v3550_v19  ;;  %v1347_v17 = vrot.slane %v3711_v62, 1 }
  0xbe   : > { %1486 = vrot.lane.b32.xlu1 %v3244_v43, %s2917_s6  ;;  %v3752_v31 = vsel %vm404_vm2, %v1174_v10, %v3735_v44  ;;  %v289_v10 = vld [vmem:[%s2970_s22 + $0xb4] sm:$0xf]  ;;  %v3780_v57 = vsel %vm404_vm2, %v539_v37, %v3755_v53 }
  0xbf   : > { %1478 = vrot.lane.b32.xlu0 %v3168_v48, %s2917_s6  ;;  %v3740_v25 = vsel %vm404_vm2, %v1166_v61, %v1170_v24  ;;  %v3764_v19 = vsel %vm723_vm0, %v1345_v56, %v1347_v17  ;;  %v3774_v63 = vsel %vm723_vm0, %v1347_v17, %v1349_v38  ;;  %v3776_v60 = vcombine.low %v288_v41, %v289_v10  ;;  %v290_v61 = vld [vmem:[%s2970_s22 + $0xb8] sm:$0xf] }
  0xc0   : > { %v1596_v22 = vpop.permute.xlu1 %1595  ;;  %v1594_v46 = vpop.permute.xlu0 %1593  ;;  %v755_v56 = vrot.slane %v3330_v13, 1  ;;  %v4504_v41 = vrot.slane %v3168_v48, 1  ;;  %v523_v17 = vor.u32 %v521_v20, %v3581_v40 }
  0xc1   : > { %1665 = vst.msk [vmem:[#allocation2 + $0x18] sm:$0xff] %vm1661_vm10, %v1596_v22  ;;  %1664 = vst.msk [vmem:[#allocation2 + $0x10] sm:$0xff] %vm1661_vm10, %v1594_v46  ;;  %v291_v22 = vld [vmem:[%s2970_s22 + $0xbc] sm:$0xf] }
  0xc2   : > { %1488 = vrot.lane.b32.xlu1 %v3330_v13, %s2917_s6  ;;  %401 = vst.msk [vmem:[#allocation2 + $0xb0] sm:$0xff] %vm378_vm1, %v3776_v60  ;;  %v3788_v43 = vcombine.low %v290_v61, %v291_v22  ;;  %v756_v13 = vsel %vm723_vm0, %v753_v12, %v755_v56  ;;  %v748_v37 = vsel %vm723_vm0, %v4504_v41, %v747_v55 }
  0xc3   : > { %1480 = vrot.lane.b32.xlu0 %v3175_v50, %s2917_s6  ;;  %v3812_v48 = vsel %vm404_vm2, %v523_v17, %v3713_v1  ;;  %v757_v50 = vrot.slane %v3340_v4, 1 }
  0xc4   : > { %v610_v24 = vpop.permute.xlu1 %609  ;;  %v1700_v42 = vpop.permute.xlu0 %1699  ;;  %402 = vst.msk [vmem:[#allocation2 + $0xb8] sm:$0xff] %vm378_vm1, %v3788_v43 }
  0xc5   : > { %678 = vst.msk [vmem:[#allocation2 + $0x20] sm:$0xff] %vm673_vm4, %v610_v24  ;;  %v3825_v1 = vsel %vm723_vm0, %v755_v56, %v757_v50  ;;  %v3838_v56 = vcombine.low %v289_v10, %v290_v61 }
  0xc6   : > { %1770 = vst.msk [vmem:[#allocation2 + $0x10] sm:$0xff] %vm1767_vm11, %v1700_v42  ;;  %1613 = vrot.lane.b32.xlu1 %v536_v11, %s2918_s7 }
  0xc7   : > { %1605 = vrot.lane.b32.xlu0 %v3748_v33, %s2918_s7  ;;  %v1188_v10 = vshrl.u32 %v3838_v56, 16 }
  0xc8   : > { %v612_v46 = vpop.permute.xlu1 %611  ;;  %v1702_v24 = vpop.permute.xlu0 %1701 }
  0xc9   : > { %679 = vst.msk [vmem:[#allocation2 + $0x28] sm:$0xff] %vm673_vm4, %v612_v46 }
  0xca   : > { %1771 = vst.msk [vmem:[#allocation2 + $0x18] sm:$0xff] %vm1767_vm11, %v1702_v24  ;;  %1615 = vrot.lane.b32.xlu1 %v3780_v57, %s2918_s7 }
  0xcb   : > { %1607 = vrot.lane.b32.xlu0 %v3578_v7, %s2918_s7 }
  0xcc   : > { %v784_v42 = vpop.permute.xlu1 %783  ;;  %v782_v46 = vpop.permute.xlu0 %781 }
  0xcd   : > { %v1794_v24 = vld [vmem:[#allocation2 + $0x10] sm:$0xff]  ;;  %851 = vst.msk [vmem:[#allocation2 + $0x28] sm:$0xff] %vm845_vm5, %v784_v42  ;;  %850 = vst.msk [vmem:[#allocation2 + $0x20] sm:$0xff] %vm845_vm5, %v782_v46  ;;  %v4505_v42 = vrot.slane %v3216_v16, 1 }
  0xce   : > { %2765 = vmatprep.mubr.msk.bf16.mxu0 %vm1843_vm12, %v1794_v24  ;;  %1719 = vrot.lane.b32.xlu1 %v756_v13, %s2919_s8  ;;  %v3846_v24 = vld [vmem:[%s2970_s22 + $0xc0] sm:$0xf] }
  0xcf   : > { %1711 = vrot.lane.b32.xlu0 %v748_v37, %s2919_s8  ;;  %v3843_v46 = vsel %vm723_vm0, %v4505_v42, %v753_v12 }
  0xd0   : > { %v929_v7 = vpop.permute.xlu1 %928  ;;  %v927_v40 = vpop.permute.xlu0 %926 }
  0xd1   : > { %v1795_v55 = vld [vmem:[#allocation2 + $0x18] sm:$0xff]  ;;  %996 = vst.msk [vmem:[#allocation2 + $0x28] sm:$0xff] %vm990_vm6, %v929_v7  ;;  %995 = vst.msk [vmem:[#allocation2 + $0x20] sm:$0xff] %vm990_vm6, %v927_v40  ;;  %v1184_v40 = vshll.u32 %v3838_v56, 16 }
  0xd2   : > { %2766 = vmatmul.mubr.msk.bf16.gmra.mrb[4].mxu0 %vm1843_vm12, %v1795_v55  ;;  %629 = vrot.lane.b32.xlu1 %v3812_v48, %s2915_s26  ;;  %v3850_v55 = vcombine.low %v291_v22, %v3846_v24 }
  0xd3   : > { %621 = vrot.lane.b32.xlu0 %v3548_v28, %s2915_s26 }
  0xd4   : > { %v1223_v20 = vpop.permute.xlu1 %1222  ;;  %v1221_v41 = vpop.permute.xlu0 %1220  ;;  %v1192_v12 = vshll.u32 %v3850_v55, 16 }
  0xd5   : > { %1290 = vst.msk [vmem:[#allocation2 + $0x28] sm:$0xff] %vm1284_vm7, %v1223_v20  ;;  %1289 = vst.msk [vmem:[#allocation2 + $0x20] sm:$0xff] %vm1284_vm7, %v1221_v41 }
  0xd6   : > { %1721 = vrot.lane.b32.xlu1 %v3825_v1, %s2919_s8 }
  0xd7   : > { %1713 = vrot.lane.b32.xlu0 %v3610_v47, %s2919_s8 }
  0xd8   : > { %v1370_v17 = vpop.permute.xlu1 %1369  ;;  %v1368_v28 = vpop.permute.xlu0 %1367 }
  0xd9   : > { %1437 = vst.msk [vmem:[#allocation2 + $0x28] sm:$0xff] %vm1431_vm8, %v1370_v17  ;;  %1436 = vst.msk [vmem:[#allocation2 + $0x20] sm:$0xff] %vm1431_vm8, %v1368_v28  ;;  %v3862_v17 = vrot.slane %v1192_v12, 1 }
  0xda   : > { %631 = vrot.lane.b32.xlu1 %v536_v11, %s2915_s26  ;;  %v1186_v11 = vrot.slane %v1184_v40, 1 }
  0xdb   : > { %623 = vrot.lane.b32.xlu0 %v3748_v33, %s2915_s26  ;;  %v1180_v33 = vshrl.u32 %v3719_v58, 16 }
  0xdc   : > { %v1473_v47 = vpop.permute.xlu1 %1472  ;;  %v1471_v7 = vpop.permute.xlu0 %1470  ;;  %v1190_v41 = vor.u32 %v1188_v10, %v1186_v11 }
  0xdd   : > { %1540 = vst.msk [vmem:[#allocation2 + $0x28] sm:$0xff] %vm1534_vm9, %v1473_v47  ;;  %1539 = vst.msk [vmem:[#allocation2 + $0x20] sm:$0xff] %vm1534_vm9, %v1471_v7  ;;  %v1182_v61 = vor.u32 %v1180_v33, %v3735_v44  ;;  %v1351_v44 = vrot.slane %v3838_v56, 1  ;;  %v1353_v7 = vrot.slane %v3850_v55, 1 }
  0xde   : > { %801 = vrot.lane.b32.xlu1 %v3843_v46, %s2914_s25 }
  0xdf   : > { %793 = vrot.lane.b32.xlu0 %v3575_v23, %s2914_s25  ;;  %v3867_v28 = vsel %vm404_vm2, %v1182_v61, %v1186_v11  ;;  %v3873_v23 = vsel %vm404_vm2, %v1190_v41, %v3862_v17 }
  0xe0   : > { %v1600_v22 = vpop.permute.xlu1 %1599  ;;  %v1598_v20 = vpop.permute.xlu0 %1597 }
  0xe1   : > { %1667 = vst.msk [vmem:[#allocation2 + $0x28] sm:$0xff] %vm1661_vm10, %v1600_v22  ;;  %1666 = vst.msk [vmem:[#allocation2 + $0x20] sm:$0xff] %vm1661_vm10, %v1598_v20  ;;  %v557_v22 = vshll.u32 %v3529_v0, 16 }
  0xe2   : > { %803 = vrot.lane.b32.xlu1 %v756_v13, %s2914_s25  ;;  %v3882_v13 = vsel %vm723_vm0, %v1349_v38, %v1351_v44 }
  0xe3   : > { %795 = vrot.lane.b32.xlu0 %v748_v37, %s2914_s25  ;;  %v3891_v37 = vsel %vm723_vm0, %v1351_v44, %v1353_v7  ;;  %v3943_v44 = vrot.slane %v557_v22, 1  ;;  %v763_v22 = vrot.slane %v3667_v49, 1 }
  0xe4   : > { %v614_v42 = vpop.permute.xlu1 %613  ;;  %v1704_v47 = vpop.permute.xlu0 %1703 }
  0xe5   : > { %680 = vst.msk [vmem:[#allocation2 + $0x30] sm:$0xff] %vm673_vm4, %v614_v42 }
  0xe6   : > { %1772 = vst.msk [vmem:[#allocation2 + $0x20] sm:$0xff] %vm1767_vm11, %v1704_v47  ;;  %946 = vrot.lane.b32.xlu1 %v3251_v52, %s2912_s23 }
  0xe7   : > { %938 = vrot.lane.b32.xlu0 %v3273_v34, %s2912_s23 }
  0xe8   : > { %v616_v40 = vpop.permute.xlu1 %615  ;;  %v1706_v33 = vpop.permute.xlu0 %1705 }
  0xe9   : > { %681 = vst.msk [vmem:[#allocation2 + $0x38] sm:$0xff] %vm673_vm4, %v616_v40 }
  0xea   : > { %1773 = vst.msk [vmem:[#allocation2 + $0x28] sm:$0xff] %vm1767_vm11, %v1706_v33  ;;  %948 = vrot.lane.b32.xlu1 %v3404_v21, %s2912_s23 }
  0xeb   : > { %940 = vrot.lane.b32.xlu0 %v3408_v9, %s2912_s23 }
  0xec   : > { %v788_v52 = vpop.permute.xlu1 %787  ;;  %v786_v38 = vpop.permute.xlu0 %785 }
  0xed   : > { %v1796_v34 = vld [vmem:[#allocation2 + $0x20] sm:$0xff]  ;;  %853 = vst.msk [vmem:[#allocation2 + $0x38] sm:$0xff] %vm845_vm5, %v788_v52  ;;  %852 = vst.msk [vmem:[#allocation2 + $0x30] sm:$0xff] %vm845_vm5, %v786_v38 }
  0xee   : > { %2769 = vmatprep.mubr.msk.bf16.mxu0 %vm1843_vm12, %v1796_v34  ;;  %1240 = vrot.lane.b32.xlu1 %v3431_v30, %s2916_s29 }
  0xef   : > { %1232 = vrot.lane.b32.xlu0 %v3434_v35, %s2916_s29 }
  0xf0   : > { %v933_v11 = vpop.permute.xlu1 %932  ;;  %v931_v21 = vpop.permute.xlu0 %930 }
  0xf1   : > { %v1797_v10 = vld [vmem:[#allocation2 + $0x28] sm:$0xff]  ;;  %998 = vst.msk [vmem:[#allocation2 + $0x38] sm:$0xff] %vm990_vm6, %v933_v11  ;;  %997 = vst.msk [vmem:[#allocation2 + $0x30] sm:$0xff] %vm990_vm6, %v931_v21 }
  0xf2   : > { %2770 = vmatmul.mubr.msk.bf16.gmra.mrb[8].mxu0 %vm1843_vm12, %v1797_v10  ;;  %1242 = vrot.lane.b32.xlu1 %v3457_v2, %s2916_s29  ;;  %v549_v2 = vshll.u32 %v3506_v54, 16 }
  0xf3   : > { %1234 = vrot.lane.b32.xlu0 %v3450_v14, %s2916_s29  ;;  %v545_v14 = vshrl.u32 %v3340_v4, 16 }
  0xf4   : > { %v1227_v9 = vpop.permute.xlu1 %1226  ;;  %v1225_v30 = vpop.permute.xlu0 %1224 }
  0xf5   : > { %1292 = vst.msk [vmem:[#allocation2 + $0x38] sm:$0xff] %vm1284_vm7, %v1227_v9  ;;  %1291 = vst.msk [vmem:[#allocation2 + $0x30] sm:$0xff] %vm1284_vm7, %v1225_v30 }
  0xf6   : > { %1387 = vrot.lane.b32.xlu1 %v3469_v8, %s2913_s24 }
  0xf7   : > { %1379 = vrot.lane.b32.xlu0 %v3474_v29, %s2913_s24  ;;  %v547_v29 = vor.u32 %v545_v14, %v3755_v53 }
  0xf8   : > { %v1374_v35 = vpop.permute.xlu1 %1373  ;;  %v1372_v12 = vpop.permute.xlu0 %1371 }
  0xf9   : > { %1439 = vst.msk [vmem:[#allocation2 + $0x38] sm:$0xff] %vm1431_vm8, %v1374_v35  ;;  %1438 = vst.msk [vmem:[#allocation2 + $0x30] sm:$0xff] %vm1431_vm8, %v1372_v12  ;;  %v565_v35 = vshll.u32 %v3667_v49, 16 }
  0xfa   : > { %1389 = vrot.lane.b32.xlu1 %v3484_v5, %s2913_s24  ;;  %v551_v5 = vrot.slane %v549_v2, 1  ;;  %v569_v2 = vshrl.u32 %v3667_v49, 16 }
  0xfb   : > { %1381 = vrot.lane.b32.xlu0 %v3489_v59, %s2913_s24  ;;  %v553_v59 = vshrl.u32 %v3506_v54, 16 }
  0xfc   : > { %v1477_v8 = vpop.permute.xlu1 %1476  ;;  %v1475_v61 = vpop.permute.xlu0 %1474 }
  0xfd   : > { %1542 = vst.msk [vmem:[#allocation2 + $0x38] sm:$0xff] %vm1534_vm9, %v1477_v8  ;;  %1541 = vst.msk [vmem:[#allocation2 + $0x30] sm:$0xff] %vm1534_vm9, %v1475_v61  ;;  %v555_v53 = vor.u32 %v553_v59, %v551_v5 }
  0xfe   : > { %1490 = vrot.lane.b32.xlu1 %v3340_v4, %s2917_s6 }
  0xff   : > { %1482 = vrot.lane.b32.xlu0 %v3205_v3, %s2917_s6  ;;  %v552_v3 = vsel %vm404_vm2, %v547_v29, %v551_v5  ;;  %v3952_v40 = vsel %vm404_vm2, %v555_v53, %v3943_v44  ;;  %v765_v53 = vrot.slane %v3673_v6, 1 }
 0x100   : > { %v1604_v20 = vpop.permute.xlu1 %1603  ;;  %v1602_v41 = vpop.permute.xlu0 %1601 }
 0x101   : > { %1669 = vst.msk [vmem:[#allocation2 + $0x38] sm:$0xff] %vm1661_vm10, %v1604_v20  ;;  %1668 = vst.msk [vmem:[#allocation2 + $0x30] sm:$0xff] %vm1661_vm10, %v1602_v41 }
 0x102   : > { %1492 = vrot.lane.b32.xlu1 %v3506_v54, %s2917_s6 }
 0x103   : > { %1484 = vrot.lane.b32.xlu0 %v3216_v16, %s2917_s6  ;;  %v759_v16 = vrot.slane %v3506_v54, 1  ;;  %v761_v54 = vrot.slane %v3529_v0, 1 }
 0x104   : > { %v618_v42 = vpop.permute.xlu1 %617  ;;  %v1708_v47 = vpop.permute.xlu0 %1707 }
 0x105   : > { %682 = vst.msk [vmem:[#allocation2 + $0x40] sm:$0xff] %vm673_vm4, %v618_v42 }
 0x106   : > { %1774 = vst.msk [vmem:[#allocation2 + $0x30] sm:$0xff] %vm1767_vm11, %v1708_v47  ;;  %1617 = vrot.lane.b32.xlu1 %v552_v3, %s2918_s7 }
 0x107   : > { %1609 = vrot.lane.b32.xlu0 %v3592_v36, %s2918_s7  ;;  %v760_v36 = vsel %vm723_vm0, %v757_v50, %v759_v16 }
 0x108   : > { %v1710_v33 = vpop.permute.xlu1 %1709  ;;  %v626_v52 = vpop.permute.xlu0 %625 }
 0x109   : > { %1775 = vst.msk [vmem:[#allocation2 + $0x38] sm:$0xff] %vm1767_vm11, %v1710_v33 }
 0x10a   : > { %686 = vst.msk [vmem:[#allocation2 + $0x60] sm:$0xff] %vm673_vm4, %v626_v52  ;;  %1619 = vrot.lane.b32.xlu1 %v3952_v40, %s2918_s7 }
 0x10b   : > { %1611 = vrot.lane.b32.xlu0 %v3812_v48, %s2918_s7 }
 0x10c   : > { %v628_v38 = vpop.permute.xlu1 %627  ;;  %v620_v34 = vpop.permute.xlu0 %619 }
 0x10d   : > { %v1798_v11 = vld [vmem:[#allocation2 + $0x30] sm:$0xff]  ;;  %687 = vst.msk [vmem:[#allocation2 + $0x68] sm:$0xff] %vm673_vm4, %v628_v38  ;;  %683 = vst.msk [vmem:[#allocation2 + $0x48] sm:$0xff] %vm673_vm4, %v620_v34 }
 0x10e   : > { %2773 = vmatprep.mubr.msk.bf16.mxu0 %vm1843_vm12, %v1798_v11  ;;  %1723 = vrot.lane.b32.xlu1 %v760_v36, %s2919_s8  ;;  %v577_v11 = vshrl.u32 %v3673_v6, 16 }
 0x10f   : > { %1715 = vrot.lane.b32.xlu0 %v3630_v27, %s2919_s8  ;;  %v3981_v27 = vsel %vm723_vm0, %v759_v16, %v761_v54 }
 0x110   : > { %v798_v48 = vpop.permute.xlu1 %797  ;;  %v790_v4 = vpop.permute.xlu0 %789  ;;  %v1799_v21 = vld [vmem:[#allocation2 + $0x38] sm:$0xff] }
 0x111   : > { %858 = vst.msk [vmem:[#allocation2 + $0x60] sm:$0xff] %vm845_vm5, %v798_v48  ;;  %854 = vst.msk [vmem:[#allocation2 + $0x40] sm:$0xff] %vm845_vm5, %v790_v4  ;;  %2774 = vmatmul.mubr.msk.bf16.gmra.mrb[12].mxu0 %vm1843_vm12, %v1799_v21 }
 0x112   : > { %1717 = vrot.lane.b32.xlu1 %v3843_v46, %s2919_s8 }
 0x113   : > { %633 = vrot.lane.b32.xlu0 %v3780_v57, %s2915_s26 }
 0x114   : > { %v800_v50 = vpop.permute.xlu1 %799  ;;  %v792_v10 = vpop.permute.xlu0 %791 }
 0x115   : > { %859 = vst.msk [vmem:[#allocation2 + $0x68] sm:$0xff] %vm845_vm5, %v800_v50  ;;  %855 = vst.msk [vmem:[#allocation2 + $0x48] sm:$0xff] %vm845_vm5, %v792_v10 }
 0x116   : > { %635 = vrot.lane.b32.xlu1 %v552_v3, %s2915_s26  ;;  %v764_v3 = vsel %vm723_vm0, %v761_v54, %v763_v22  ;;  %v585_v54 = vshrl.u32 %v3776_v60, 16 }
 0x117   : > { %1725 = vrot.lane.b32.xlu0 %v3981_v27, %s2919_s8 }
 0x118   : > { %v943_v46 = vpop.permute.xlu1 %942  ;;  %v935_v9 = vpop.permute.xlu0 %934 }
 0x119   : > { %1003 = vst.msk [vmem:[#allocation2 + $0x60] sm:$0xff] %vm990_vm6, %v943_v46  ;;  %999 = vst.msk [vmem:[#allocation2 + $0x40] sm:$0xff] %vm990_vm6, %v935_v9  ;;  %v767_v9 = vrot.slane %v3776_v60, 1 }
 0x11a   : > { %807 = vrot.lane.b32.xlu1 %v760_v36, %s2914_s25  ;;  %v581_v36 = vshll.u32 %v3776_v60, 16 }
 0x11b   : > { %805 = vrot.lane.b32.xlu0 %v3825_v1, %s2914_s25  ;;  %v561_v1 = vshrl.u32 %v3529_v0, 16 }
 0x11c   : > { %v945_v57 = vpop.permute.xlu1 %944  ;;  %v937_v30 = vpop.permute.xlu0 %936 }
 0x11d   : > { %1004 = vst.msk [vmem:[#allocation2 + $0x68] sm:$0xff] %vm990_vm6, %v945_v57  ;;  %1000 = vst.msk [vmem:[#allocation2 + $0x48] sm:$0xff] %vm990_vm6, %v937_v30 }
 0x11e   : > { %952 = vrot.lane.b32.xlu1 %v3605_v18, %s2912_s23  ;;  %v573_v18 = vshll.u32 %v3673_v6, 16 }
 0x11f   : > { %950 = vrot.lane.b32.xlu0 %v3428_v15, %s2912_s23  ;;  %v567_v15 = vrot.slane %v565_v35, 1  ;;  %v768_v35 = vsel %vm723_vm0, %v765_v53, %v767_v9 }
 0x120   : > { %v1237_v12 = vpop.permute.xlu1 %1236  ;;  %v575_v29 = vrot.slane %v573_v18, 1 }
 0x121   : > { %v1229_v14 = vpop.permute.xlu0 %1228  ;;  %1297 = vst.msk [vmem:[#allocation2 + $0x60] sm:$0xff] %vm1284_vm7, %v1237_v12  ;;  %v4103_v12 = vrot.slane %v3788_v43, 1 }
 0x122   : > { %1293 = vst.msk [vmem:[#allocation2 + $0x40] sm:$0xff] %vm1284_vm7, %v1229_v14  ;;  %1246 = vrot.lane.b32.xlu1 %v3646_v32, %s2916_s29  ;;  %v571_v32 = vor.u32 %v569_v2, %v567_v15 }
 0x123   : > { %1244 = vrot.lane.b32.xlu0 %v3638_v39, %s2916_s29  ;;  %v563_v39 = vor.u32 %v561_v1, %v3943_v44 }
 0x124   : > { %v1239_v8 = vpop.permute.xlu1 %1238 }
 0x125   : > { %v1231_v61 = vpop.permute.xlu0 %1230  ;;  %1298 = vst.msk [vmem:[#allocation2 + $0x68] sm:$0xff] %vm1284_vm7, %v1239_v8 }
 0x126   : > { %1294 = vst.msk [vmem:[#allocation2 + $0x48] sm:$0xff] %vm1284_vm7, %v1231_v61  ;;  %1393 = vrot.lane.b32.xlu1 %v3665_v51, %s2913_s24  ;;  %v4024_v51 = vsel %vm404_vm2, %v571_v32, %v575_v29 }
 0x127   : > { %1391 = vrot.lane.b32.xlu0 %v3655_v45, %s2913_s24  ;;  %v568_v45 = vsel %vm404_vm2, %v563_v39, %v567_v15  ;;  %v293_v39 = vld [vmem:[%s2970_s22 + $0xc4] sm:$0xf] }
 0x128   : > { %v1384_v5 = vpop.permute.xlu1 %1383  ;;  %v2694_v32 = vcombine.low %v3846_v24, %v293_v39 }
 0x129   : > { %v1376_v59 = vpop.permute.xlu0 %1375  ;;  %1444 = vst.msk [vmem:[#allocation2 + $0x60] sm:$0xff] %vm1431_vm8, %v1384_v5 }
 0x12a   : > { %1440 = vst.msk [vmem:[#allocation2 + $0x40] sm:$0xff] %vm1431_vm8, %v1376_v59  ;;  %1496 = vrot.lane.b32.xlu1 %v3667_v49, %s2917_s6  ;;  %v4044_v49 = vsel %vm723_vm0, %v763_v22, %v765_v53  ;;  %v294_v59 = vld [vmem:[%s2970_s22 + $0xc8] sm:$0xf]  ;;  %v1565_v53 = vshrl.u32 %v2694_v32, 16 }
 0x12b   : > { %1494 = vrot.lane.b32.xlu0 %v3529_v0, %s2917_s6 }
 0x12c   : > { %v1386_v20 = vpop.permute.xlu1 %1385 }
 0x12d   : > { %v1378_v41 = vpop.permute.xlu0 %1377  ;;  %1445 = vst.msk [vmem:[#allocation2 + $0x68] sm:$0xff] %vm1431_vm8, %v1386_v20 }
 0x12e   : > { %1441 = vst.msk [vmem:[#allocation2 + $0x48] sm:$0xff] %vm1431_vm8, %v1378_v41  ;;  %1623 = vrot.lane.b32.xlu1 %v4024_v51, %s2918_s7 }
 0x12f   : > { %1621 = vrot.lane.b32.xlu0 %v568_v45, %s2918_s7 }
 0x130   : > { %v1487_v44 = vpop.permute.xlu1 %1486 }
 0x131   : > { %v1479_v42 = vpop.permute.xlu0 %1478  ;;  %1547 = vst.msk [vmem:[#allocation2 + $0x60] sm:$0xff] %vm1534_vm9, %v1487_v44 }
 0x132   : > { %1543 = vst.msk [vmem:[#allocation2 + $0x40] sm:$0xff] %vm1534_vm9, %v1479_v42  ;;  %637 = vrot.lane.b32.xlu1 %v3952_v40, %s2915_s26 }
 0x133   : > { %1727 = vrot.lane.b32.xlu0 %v764_v3, %s2919_s8 }
 0x134   : > { %v1489_v0 = vpop.permute.xlu1 %1488 }
 0x135   : > { %v1481_v47 = vpop.permute.xlu0 %1480  ;;  %1548 = vst.msk [vmem:[#allocation2 + $0x68] sm:$0xff] %vm1534_vm9, %v1489_v0  ;;  %v2668_v0 = vcombine.low %v3846_v24, %v3846_v24 }
 0x136   : > { %1544 = vst.msk [vmem:[#allocation2 + $0x48] sm:$0xff] %vm1534_vm9, %v1481_v47  ;;  %639 = vrot.lane.b32.xlu1 %v568_v45, %s2915_s26  ;;  %v295_v45 = vld [vmem:[%s2970_s22 + $0xcc] sm:$0xf] }
 0x137   : > { %1729 = vrot.lane.b32.xlu0 %v4044_v49, %s2919_s8  ;;  %v4136_v22 = vcombine.low %v294_v59, %v295_v45 }
 0x138   : > { %v1614_v16 = vpop.permute.xlu1 %1613 }
 0x139   : > { %v1606_v33 = vpop.permute.xlu0 %1605  ;;  %1674 = vst.msk [vmem:[#allocation2 + $0x60] sm:$0xff] %vm1661_vm10, %v1614_v16 }
 0x13a   : > { %1670 = vst.msk [vmem:[#allocation2 + $0x40] sm:$0xff] %vm1661_vm10, %v1606_v33  ;;  %811 = vrot.lane.b32.xlu1 %v764_v3, %s2914_s25  ;;  %v1687_v33 = vrot.slane %v2694_v32, 1 }
 0x13b   : > { %809 = vrot.lane.b32.xlu0 %v3981_v27, %s2914_s25 }
 0x13c   : > { %v1616_v40 = vpop.permute.xlu1 %1615 }
 0x13d   : > { %v1608_v52 = vpop.permute.xlu0 %1607  ;;  %1675 = vst.msk [vmem:[#allocation2 + $0x68] sm:$0xff] %vm1661_vm10, %v1616_v40  ;;  %v597_v40 = vshll.u32 %v2668_v0, 16 }
 0x13e   : > { %1671 = vst.msk [vmem:[#allocation2 + $0x48] sm:$0xff] %vm1661_vm10, %v1608_v52  ;;  %956 = vrot.lane.b32.xlu1 %v3711_v62, %s2912_s23  ;;  %v589_v62 = vshll.u32 %v3788_v43, 16 }
 0x13f   : > { %954 = vrot.lane.b32.xlu0 %v3616_v26, %s2912_s23  ;;  %v583_v26 = vrot.slane %v581_v36, 1  ;;  %v1689_v36 = vrot.slane %v4136_v22, 1 }
 0x140   : > { %v1720_v38 = vpop.permute.xlu1 %1719  ;;  %v4078_v21 = vrot.slane %v589_v62, 1 }
 0x141   : > { %v1712_v34 = vpop.permute.xlu0 %1711  ;;  %1780 = vst.msk [vmem:[#allocation2 + $0x60] sm:$0xff] %vm1767_vm11, %v1720_v38  ;;  %v599_v38 = vrot.slane %v597_v40, 1  ;;  %v1690_v62 = vsel %vm723_vm0, %v1687_v33, %v1689_v36 }
 0x142   : > { %1776 = vst.msk [vmem:[#allocation2 + $0x40] sm:$0xff] %vm1767_vm11, %v1712_v34  ;;  %1250 = vrot.lane.b32.xlu1 %v3752_v31, %s2916_s29  ;;  %v587_v31 = vor.u32 %v585_v54, %v583_v26  ;;  %v2692_v34 = vcombine.low %v293_v39, %v294_v59  ;;  %v771_v54 = vrot.slane %v2668_v0, 1 }
 0x143   : > { %1248 = vrot.lane.b32.xlu0 %v3740_v25, %s2916_s29  ;;  %v579_v25 = vor.u32 %v577_v11, %v575_v29 }
 0x144   : > { %v630_v48 = vpop.permute.xlu1 %629 }
 0x145   : > { %v622_v4 = vpop.permute.xlu0 %621  ;;  %688 = vst.msk [vmem:[#allocation2 + $0x70] sm:$0xff] %vm673_vm4, %v630_v48 }
 0x146   : > { %684 = vst.msk [vmem:[#allocation2 + $0x50] sm:$0xff] %vm673_vm4, %v622_v4  ;;  %1397 = vrot.lane.b32.xlu1 %v3774_v63, %s2913_s24  ;;  %v4091_v63 = vsel %vm404_vm2, %v587_v31, %v4078_v21  ;;  %v1200_v4 = vshll.u32 %v2692_v34, 16 }
 0x147   : > { %1395 = vrot.lane.b32.xlu0 %v3764_v19, %s2913_s24  ;;  %v584_v19 = vsel %vm404_vm2, %v579_v25, %v583_v26  ;;  %v2693_v25 = vcombine.low %v295_v45, %v295_v45 }
 0x148   : > { %v1722_v27 = vpop.permute.xlu1 %1721  ;;  %v1804_v46 = vld [vmem:[#allocation2 + $0x60] sm:$0xff] }
 0x149   : > { %v1714_v50 = vpop.permute.xlu0 %1713  ;;  %v1800_v10 = vld [vmem:[#allocation2 + $0x40] sm:$0xff]  ;;  %1781 = vst.msk [vmem:[#allocation2 + $0x68] sm:$0xff] %vm1767_vm11, %v1722_v27  ;;  %2785 = vmatprep.mubr.msk.bf16.mxu1 %vm1843_vm12, %v1804_v46  ;;  %v772_v27 = vsel %vm723_vm0, %v4103_v12, %v771_v54  ;;  %v1204_v46 = vshrl.u32 %v2692_v34, 16 }
 0x14a   : > { %1777 = vst.msk [vmem:[#allocation2 + $0x48] sm:$0xff] %vm1767_vm11, %v1714_v50  ;;  %2777 = vmatprep.mubr.msk.bf16.mxu0 %vm1843_vm12, %v1800_v10  ;;  %1500 = vrot.lane.b32.xlu1 %v3776_v60, %s2917_s6  ;;  %v1196_v50 = vshrl.u32 %v3850_v55, 16  ;;  %v1202_v10 = vrot.slane %v1200_v4, 1 }
 0x14b   : > { %1498 = vrot.lane.b32.xlu0 %v3673_v6, %s2917_s6  ;;  %v4114_v6 = vsel %vm723_vm0, %v767_v9, %v4103_v12 }
 0x14c   : > { %v632_v57 = vpop.permute.xlu1 %631 }
 0x14d   : > { %v624_v30 = vpop.permute.xlu0 %623  ;;  %689 = vst.msk [vmem:[#allocation2 + $0x78] sm:$0xff] %vm673_vm4, %v632_v57  ;;  %v1198_v57 = vor.u32 %v1196_v50, %v3862_v17 }
 0x14e   : > { %685 = vst.msk [vmem:[#allocation2 + $0x58] sm:$0xff] %vm673_vm4, %v624_v30  ;;  %1627 = vrot.lane.b32.xlu1 %v4091_v63, %s2918_s7  ;;  %v1206_v30 = vor.u32 %v1204_v46, %v1202_v10 }
 0x14f   : > { %1625 = vrot.lane.b32.xlu0 %v584_v19, %s2918_s7 }
 0x150   : > { %v802_v14 = vpop.permute.xlu1 %801  ;;  %v1805_v15 = vld [vmem:[#allocation2 + $0x68] sm:$0xff] }
 0x151   : > { %v794_v60 = vpop.permute.xlu0 %793  ;;  %v1801_v1 = vld [vmem:[#allocation2 + $0x48] sm:$0xff]  ;;  %860 = vst.msk [vmem:[#allocation2 + $0x70] sm:$0xff] %vm845_vm5, %v802_v14  ;;  %2786 = vmatmul.mubr.msk.bf16.vlgmr.msra.gmra.mrb[0].mxu1 %vm1843_vm12, %v1805_v15  ;;  %v1203_v15 = vsel %vm404_vm2, %v1198_v57, %v1202_v10 }
 0x152   : > { %856 = vst.msk [vmem:[#allocation2 + $0x50] sm:$0xff] %vm845_vm5, %v794_v60  ;;  %2778 = vmatmul.mubr.msk.bf16.gmra.mrb[16].mxu0 %vm1843_vm12, %v1801_v1  ;;  %641 = vrot.lane.b32.xlu1 %v4024_v51, %s2915_s26  ;;  %v1561_v51 = vshll.u32 %v2694_v32, 16  ;;  %v1355_v1 = vrot.slane %v2692_v34, 1 }
 0x153   : > { %1731 = vrot.lane.b32.xlu0 %v768_v35, %s2919_s8 }
 0x154   : > { %v804_v2 = vpop.permute.xlu1 %803  ;;  %v1563_v3 = vrot.slane %v1561_v51, 1  ;;  %v1356_v39 = vsel %vm723_vm0, %v1353_v7, %v1355_v1 }
 0x155   : > { %v796_v18 = vpop.permute.xlu0 %795  ;;  %861 = vst.msk [vmem:[#allocation2 + $0x78] sm:$0xff] %vm845_vm5, %v804_v2 }
 0x156   : > { %857 = vst.msk [vmem:[#allocation2 + $0x58] sm:$0xff] %vm845_vm5, %v796_v18  ;;  %643 = vrot.lane.b32.xlu1 %v584_v19, %s2915_s26  ;;  %v1208_v19 = vshll.u32 %v2693_v25, 16  ;;  %v4206_v18 = vld [vmem:[%s2970_s22 + $0xd8] ss:$0 sps:$4 sm:$0xff]  }
 0x157   : > { %1733 = vrot.lane.b32.xlu0 %v4114_v6, %s2919_s8  ;;  %v1585_v51 = vshll.u32 %v4206_v18, 16 }
 0x158   : > { %v947_v8 = vpop.permute.xlu1 %946 }
 0x159   : > { %v939_v61 = vpop.permute.xlu0 %938  ;;  %1005 = vst.msk [vmem:[#allocation2 + $0x70] sm:$0xff] %vm990_vm6, %v947_v8 }
 0x15a   : > { %1001 = vst.msk [vmem:[#allocation2 + $0x50] sm:$0xff] %vm990_vm6, %v939_v61  ;;  %815 = vrot.lane.b32.xlu1 %v768_v35, %s2914_s25  ;;  %v1210_v35 = vrot.slane %v1208_v19, 1 }
 0x15b   : > { %813 = vrot.lane.b32.xlu0 %v4044_v49, %s2914_s25 }
 0x15c   : > { %v949_v29 = vpop.permute.xlu1 %948  ;;  %v1211_v17 = vsel %vm404_vm2, %v1206_v30, %v1210_v35 }
 0x15d   : > { %v941_v5 = vpop.permute.xlu0 %940  ;;  %1006 = vst.msk [vmem:[#allocation2 + $0x78] sm:$0xff] %vm990_vm6, %v949_v29  ;;  %v4220_v29 = vld [vmem:[%s4499_s2] ss:$0 sm:$0xff] }
 0x15e   : > { %1002 = vst.msk [vmem:[#allocation2 + $0x58] sm:$0xff] %vm990_vm6, %v941_v5  ;;  %960 = vrot.lane.b32.xlu1 %v3838_v56, %s2912_s23  ;;  %v1569_v56 = vshll.u32 %v4136_v22, 16 }
 0x15f   : > { %958 = vrot.lane.b32.xlu0 %v3719_v58, %s2912_s23  ;;  %v593_v58 = vshrl.u32 %v3788_v43, 16 }
 0x160   : > { %v1241_v20 = vpop.permute.xlu1 %1240  ;;  %v4153_v49 = vrot.slane %v1569_v56, 1 }
 0x161   : > { %v1233_v41 = vpop.permute.xlu0 %1232  ;;  %1299 = vst.msk [vmem:[#allocation2 + $0x70] sm:$0xff] %vm1284_vm7, %v1241_v20 }
 0x162   : > { %1295 = vst.msk [vmem:[#allocation2 + $0x50] sm:$0xff] %vm1284_vm7, %v1233_v41  ;;  %1254 = vrot.lane.b32.xlu1 %v3873_v23, %s2916_s29  ;;  %v1567_v23 = vor.u32 %v1565_v53, %v1563_v3 }
 0x163   : > { %1252 = vrot.lane.b32.xlu0 %v3867_v28, %s2916_s29  ;;  %v595_v28 = vor.u32 %v593_v58, %v4078_v21 }
 0x164   : > { %v1243_v44 = vpop.permute.xlu1 %1242 }
 0x165   : > { %v1235_v42 = vpop.permute.xlu0 %1234  ;;  %1300 = vst.msk [vmem:[#allocation2 + $0x78] sm:$0xff] %vm1284_vm7, %v1243_v44  ;;  %v600_v48 = vsel %vm404_vm2, %v595_v28, %v599_v38 }
 0x166   : > { %1296 = vst.msk [vmem:[#allocation2 + $0x58] sm:$0xff] %vm1284_vm7, %v1235_v42  ;;  %1401 = vrot.lane.b32.xlu1 %v3891_v37, %s2913_s24  ;;  %v1572_v37 = vsel %vm404_vm2, %v1567_v23, %v4153_v49  ;;  %v1587_v42 = vrot.slane %v1585_v51, 1 }
 0x167   : > { %1399 = vrot.lane.b32.xlu0 %v3882_v13, %s2913_s24  ;;  %v1564_v13 = vsel %vm404_vm2, %v595_v28, %v1563_v3 }
 0x168   : > { %v1388_v47 = vpop.permute.xlu1 %1387 }
 0x169   : > { %v1380_v16 = vpop.permute.xlu0 %1379  ;;  %1446 = vst.msk [vmem:[#allocation2 + $0x70] sm:$0xff] %vm1431_vm8, %v1388_v47 }
 0x16a   : > { %1442 = vst.msk [vmem:[#allocation2 + $0x50] sm:$0xff] %vm1431_vm8, %v1380_v16  ;;  %1504 = vrot.lane.b32.xlu1 %v2694_v32, %s2917_s6  ;;  %v1573_v32 = vshrl.u32 %v4136_v22, 16 }
 0x16b   : > { %1502 = vrot.lane.b32.xlu0 %v3788_v43, %s2917_s6  ;;  %v1688_v43 = vsel %vm723_vm0, %v4103_v12, %v1687_v33  ;;  %v4195_v12 = vld [vmem:[%s2970_s22 + $0xd0] sm:$0xff]  }
 0x16c   : > { %v1390_v52 = vpop.permute.xlu1 %1389  ;;  %v1577_v2 = vshll.u32 %v4195_v12, 16  ;;  %v1581_v45 = vshrl.u32 %v4195_v12, 16  ;;  %v1575_v3 = vor.u32 %v1573_v32, %v4153_v49  ;;  %v1691_v38 = vrot.slane %v4195_v12, 1 }
 0x16d   : > { %v1382_v24 = vpop.permute.xlu0 %1381  ;;  %1447 = vst.msk [vmem:[#allocation2 + $0x78] sm:$0xff] %vm1431_vm8, %v1390_v52 }
 0x16e   : > { %1443 = vst.msk [vmem:[#allocation2 + $0x58] sm:$0xff] %vm1431_vm8, %v1382_v24  ;;  %1631 = vrot.lane.b32.xlu1 %v1572_v37, %s2918_s7  ;;  %v1579_v59 = vrot.slane %v1577_v2, 1 }
 0x16f   : > { %1629 = vrot.lane.b32.xlu0 %v1564_v13, %s2918_s7 }
 0x170   : > { %v1491_v11 = vpop.permute.xlu1 %1490  ;;  %v1583_v44 = vor.u32 %v1581_v45, %v1579_v59  ;;  %v1580_v52 = vsel %vm404_vm2, %v1575_v3, %v1579_v59 }
 0x171   : > { %v1483_v26 = vpop.permute.xlu0 %1482  ;;  %1549 = vst.msk [vmem:[#allocation2 + $0x70] sm:$0xff] %vm1534_vm9, %v1491_v11 }
 0x172   : > { %1545 = vst.msk [vmem:[#allocation2 + $0x50] sm:$0xff] %vm1534_vm9, %v1483_v26  ;;  %645 = vrot.lane.b32.xlu1 %v4091_v63, %s2915_s26 }
 0x173   : > { %1735 = vrot.lane.b32.xlu0 %v1688_v43, %s2919_s8  ;;  %v1588_v43 = vsel %vm404_vm2, %v1583_v44, %v1587_v42 }
 0x174   : > { %v1493_v31 = vpop.permute.xlu1 %1492 }
 0x175   : > { %v1485_v21 = vpop.permute.xlu0 %1484  ;;  %1550 = vst.msk [vmem:[#allocation2 + $0x78] sm:$0xff] %vm1534_vm9, %v1493_v31 }
 0x176   : > { %1546 = vst.msk [vmem:[#allocation2 + $0x58] sm:$0xff] %vm1534_vm9, %v1485_v21  ;;  %647 = vrot.lane.b32.xlu1 %v600_v48, %s2915_s26  ;;  %v1692_v48 = vsel %vm723_vm0, %v1689_v36, %v1691_v38 }
 0x177   : > { %1737 = vrot.lane.b32.xlu0 %v1690_v62, %s2919_s8 }
 0x178   : > { %v1618_v63 = vpop.permute.xlu1 %1617 }
 0x179   : > { %v1610_v9 = vpop.permute.xlu0 %1609  ;;  %1676 = vst.msk [vmem:[#allocation2 + $0x70] sm:$0xff] %vm1661_vm10, %v1618_v63 }
 0x17a   : > { %1672 = vst.msk [vmem:[#allocation2 + $0x50] sm:$0xff] %vm1661_vm10, %v1610_v9  ;;  %819 = vrot.lane.b32.xlu1 %v772_v27, %s2914_s25 }
 0x17b   : > { %817 = vrot.lane.b32.xlu0 %v4114_v6, %s2914_s25  ;;  %v1357_v6 = vrot.slane %v2693_v25, 1 }
 0x17c   : > { %v1620_v14 = vpop.permute.xlu1 %1619 }
 0x17d   : > { %v1612_v60 = vpop.permute.xlu0 %1611  ;;  %1677 = vst.msk [vmem:[#allocation2 + $0x78] sm:$0xff] %vm1661_vm10, %v1620_v14  ;;  %v1358_v5 = vsel %vm723_vm0, %v1355_v1, %v1357_v6 }
 0x17e   : > { %1673 = vst.msk [vmem:[#allocation2 + $0x58] sm:$0xff] %vm1661_vm10, %v1612_v60  ;;  %964 = vrot.lane.b32.xlu1 %v2692_v34, %s2912_s23  ;;  %v1693_v34 = vrot.slane %v4206_v18, 1 }
 0x17f   : > { %962 = vrot.lane.b32.xlu0 %v3850_v55, %s2912_s23  ;;  %s4425_s23 = scalar_lea.vmem %s4501_s4, %s4511_s15 }
 0x180   : > { %v1724_v8 = vpop.permute.xlu1 %1723  ;;  %v1694_v4 = vsel %vm723_vm0, %v1691_v38, %v1693_v34 }
 0x181   : > { %v1716_v61 = vpop.permute.xlu0 %1715  ;;  %1782 = vst.msk [vmem:[#allocation2 + $0x70] sm:$0xff] %vm1767_vm11, %v1724_v8 }
 0x182   : > { %1778 = vst.msk [vmem:[#allocation2 + $0x50] sm:$0xff] %vm1767_vm11, %v1716_v61  ;;  %1258 = vrot.lane.b32.xlu1 %v1211_v17, %s2916_s29 }
 0x183   : > { %1256 = vrot.lane.b32.xlu0 %v1203_v15, %s2916_s29 }
 0x184   : > { %v1718_v20 = vpop.permute.xlu1 %1717 }
 0x185   : > { %v634_v41 = vpop.permute.xlu0 %633  ;;  %1779 = vst.msk [vmem:[#allocation2 + $0x58] sm:$0xff] %vm1767_vm11, %v1718_v20  ;;  %v2763_v55 = vpop.f32.mrb[0].mxu0 }
 0x186   : > { %690 = vst.msk [vmem:[#allocation2 + $0x80] sm:$0xff] %vm673_vm4, %v634_v41  ;;  %v1963_v7 = vadd.f32 %v2763_v55, %v4220_v29  ;;  %v1954_v58 = vpop.f32.mrb[1].mxu0  ;;  %1405 = vrot.lane.b32.xlu1 %v1358_v5, %s2913_s24 }
 0x187   : > { %1403 = vrot.lane.b32.xlu0 %v1356_v39, %s2913_s24  ;;  %v1955_v53 = vadd.f32 %v4220_v29, %v1954_v58  ;;  %v2764_v56 = vpop.f32.mrb[2].mxu0 }
 0x188   : > { %v2147_v28 = vmax.f32 %v1963_v7, 0.0  ;;  %v1966_v23 = vadd.f32 %v2764_v56, %v4220_v29  ;;  %v1957_v0 = vpop.f32.mrb[3].mxu0  ;;  %v1806_v49 = vld [vmem:[#allocation2 + $0x70] sm:$0xff]  ;;  %v636_v33 = vpop.permute.xlu1 %635 }
 0x189   : > { %v1726_v47 = vpop.permute.xlu0 %1725  ;;  %v1802_v16 = vld [vmem:[#allocation2 + $0x50] sm:$0xff]  ;;  %v2145_v13 = vmax.f32 %v1955_v53, 0.0  ;;  %v1958_v37 = vadd.f32 %v4220_v29, %v1957_v0  ;;  %2789 = vmatprep.mubr.msk.bf16.mxu1 %vm1843_vm12, %v1806_v49  ;;  %691 = vst.msk [vmem:[#allocation2 + $0x88] sm:$0xff] %vm673_vm4, %v636_v33 }
 0x18a   : > { %1783 = vst.msk [vmem:[#allocation2 + $0x78] sm:$0xff] %vm1767_vm11, %v1726_v47  ;;  %2781 = vmatprep.mubr.msk.bf16.mxu0 %vm1843_vm12, %v1802_v16  ;;  %v2148_v40 = vmax.f32 %v1966_v23, 0.0  ;;  %1508 = vrot.lane.b32.xlu1 %v4195_v12, %s2917_s6 }
 0x18b   : > { %2196 = vst.msk [vmem:[%s4234_s20 + $0x10] sm:$0xff] %vm2193_vm13, %v2147_v28  ;;  %1506 = vrot.lane.b32.xlu0 %v4136_v22, %s2917_s6  ;;  %2194 = vst.msk [vmem:[%s4234_s20] sm:$0xff] %vm2193_vm13, %v2145_v13  ;;  %v2146_v24 = vmax.f32 %v1958_v37, 0.0 }
 0x18c   : > { %2197 = vst.msk [vmem:[%s4234_s20 + $0x18] sm:$0xff] %vm2193_vm13, %v2148_v40  ;;  %v1803_v26 = vld [vmem:[#allocation2 + $0x58] sm:$0xff]  ;;  %v808_v62 = vpop.permute.xlu1 %807 }
 0x18d   : > { %v806_v11 = vpop.permute.xlu0 %805  ;;  %2195 = vst.msk [vmem:[%s4234_s20 + $0x8] sm:$0xff] %vm2193_vm13, %v2146_v24  ;;  %v2474_v54 = vadd.f32 %v2146_v24, %v2145_v13  ;;  %2782 = vmatmul.mubr.msk.bf16.gmra.mrb[20].mxu0 %vm1843_vm12, %v1803_v26 }
 0x18e   : > { %862 = vst.msk [vmem:[#allocation2 + $0x80] sm:$0xff] %vm845_vm5, %v806_v11  ;;  %863 = vst.msk [vmem:[#allocation2 + $0x88] sm:$0xff] %vm845_vm5, %v808_v62  ;;  %1635 = vrot.lane.b32.xlu1 %v1588_v43, %s2918_s7 }
 0x18f   : > { %1633 = vrot.lane.b32.xlu0 %v1580_v52, %s2918_s7  ;;  %v2476_v25 = vadd.f32 %v2474_v54, %v2148_v40 }
 0x190   : > { %v953_v27 = vpop.permute.xlu1 %952 }
 0x191   : > { %v951_v31 = vpop.permute.xlu0 %950  ;;  %v1807_v21 = vld [vmem:[#allocation2 + $0x78] sm:$0xff]  ;;  %1008 = vst.msk [vmem:[#allocation2 + $0x88] sm:$0xff] %vm990_vm6, %v953_v27 }
 0x192   : > { %1007 = vst.msk [vmem:[#allocation2 + $0x80] sm:$0xff] %vm990_vm6, %v951_v31  ;;  %2790 = vmatmul.mubr.msk.bf16.gmra.mrb[4].mxu1 %vm1843_vm12, %v1807_v21  ;;  %1741 = vrot.lane.b32.xlu1 %v1694_v4, %s2919_s8 }
 0x193   : > { %1739 = vrot.lane.b32.xlu0 %v1692_v48, %s2919_s8 }
 0x194   : > { %v1247_v22 = vpop.permute.xlu1 %1246 }
 0x195   : > { %v1245_v50 = vpop.permute.xlu0 %1244  ;;  %1302 = vst.msk [vmem:[#allocation2 + $0x88] sm:$0xff] %vm1284_vm7, %v1247_v22 }
 0x196   : > { %1301 = vst.msk [vmem:[#allocation2 + $0x80] sm:$0xff] %vm1284_vm7, %v1245_v50 }
 0x198   : > { %v1394_v10 = vpop.permute.xlu1 %1393 }
 0x199   : > { %v1392_v36 = vpop.permute.xlu0 %1391  ;;  %1449 = vst.msk [vmem:[#allocation2 + $0x88] sm:$0xff] %vm1431_vm8, %v1394_v10 }
 0x19a   : > { %1448 = vst.msk [vmem:[#allocation2 + $0x80] sm:$0xff] %vm1431_vm8, %v1392_v36 }
 0x19c   : > { %v1497_v19 = vpop.permute.xlu1 %1496 }
 0x19d   : > { %v1495_v46 = vpop.permute.xlu0 %1494  ;;  %1552 = vst.msk [vmem:[#allocation2 + $0x88] sm:$0xff] %vm1534_vm9, %v1497_v19 }
 0x19e   : > { %1551 = vst.msk [vmem:[#allocation2 + $0x80] sm:$0xff] %vm1534_vm9, %v1495_v46 }
 0x1a0   : > { %v1624_v9 = vpop.permute.xlu1 %1623 }
 0x1a1   : > { %v1622_v63 = vpop.permute.xlu0 %1621  ;;  %1679 = vst.msk [vmem:[#allocation2 + $0x88] sm:$0xff] %vm1661_vm10, %v1624_v9 }
 0x1a2   : > { %1678 = vst.msk [vmem:[#allocation2 + $0x80] sm:$0xff] %vm1661_vm10, %v1622_v63 }
 0x1a4   : > { %v638_v12 = vpop.permute.xlu1 %637 }
 0x1a5   : > { %v1728_v57 = vpop.permute.xlu0 %1727  ;;  %v2767_v30 = vpop.f32.mrb[4].mxu0  ;;  %692 = vst.msk [vmem:[#allocation2 + $0x90] sm:$0xff] %vm673_vm4, %v638_v12 }
 0x1a6   : > { %1784 = vst.msk [vmem:[#allocation2 + $0x80] sm:$0xff] %vm1767_vm11, %v1728_v57  ;;  %v1979_v35 = vadd.f32 %v2767_v30, %v4220_v29  ;;  %v1970_v14 = vpop.f32.mrb[5].mxu0 }
 0x1a7   : > { %v1971_v60 = vadd.f32 %v4220_v29, %v1970_v14  ;;  %v2768_v1 = vpop.f32.mrb[6].mxu0 }
 0x1a8   : > { %v2151_v15 = vmax.f32 %v1979_v35, 0.0  ;;  %v1982_v17 = vadd.f32 %v2768_v1, %v4220_v29  ;;  %v1973_v6 = vpop.f32.mrb[7].mxu0  ;;  %v640_v39 = vpop.permute.xlu1 %639 }
 0x1a9   : > { %v2149_v2 = vmax.f32 %v1971_v60, 0.0  ;;  %v1974_v18 = vadd.f32 %v4220_v29, %v1973_v6  ;;  %v1730_v8 = vpop.permute.xlu0 %1729  ;;  %693 = vst.msk [vmem:[#allocation2 + $0x98] sm:$0xff] %vm673_vm4, %v640_v39 }
 0x1aa   : > { %2200 = vst.msk [vmem:[%s4234_s20 + $0x30] sm:$0xff] %vm2193_vm13, %v2151_v15  ;;  %v2152_v61 = vmax.f32 %v1982_v17, 0.0 }
 0x1ab   : > { %1785 = vst.msk [vmem:[#allocation2 + $0x88] sm:$0xff] %vm1767_vm11, %v1730_v8  ;;  %v2477_v32 = vadd.f32 %v2476_v25, %v2149_v2  ;;  %v2150_v5 = vmax.f32 %v1974_v18, 0.0 }
 0x1ac   : > { %2198 = vst.msk [vmem:[%s4234_s20 + $0x20] sm:$0xff] %vm2193_vm13, %v2149_v2  ;;  %2201 = vst.msk [vmem:[%s4234_s20 + $0x38] sm:$0xff] %vm2193_vm13, %v2152_v61  ;;  %v812_v20 = vpop.permute.xlu1 %811 }
 0x1ad   : > { %v2479_v59 = vadd.f32 %v2477_v32, %v2151_v15  ;;  %2199 = vst.msk [vmem:[%s4234_s20 + $0x28] sm:$0xff] %vm2193_vm13, %v2150_v5  ;;  %v810_v45 = vpop.permute.xlu0 %809  ;;  %v1808_v51 = vld [vmem:[#allocation2 + $0x80] sm:$0xff] }
 0x1ae   : > { %864 = vst.msk [vmem:[#allocation2 + $0x90] sm:$0xff] %vm845_vm5, %v810_v45  ;;  %2793 = vmatprep.mubr.msk.bf16.mxu1 %vm1843_vm12, %v1808_v51  ;;  %865 = vst.msk [vmem:[#allocation2 + $0x98] sm:$0xff] %vm845_vm5, %v812_v20 }
 0x1af   : > { %v2480_v41 = vadd.f32 %v2479_v59, %v2152_v61 }
 0x1b0   : > { %v957_v58 = vpop.permute.xlu1 %956 }
 0x1b1   : > { %v955_v55 = vpop.permute.xlu0 %954  ;;  %1010 = vst.msk [vmem:[#allocation2 + $0x98] sm:$0xff] %vm990_vm6, %v957_v58 }
 0x1b2   : > { %v1809_v7 = vld [vmem:[#allocation2 + $0x88] sm:$0xff]  ;;  %1009 = vst.msk [vmem:[#allocation2 + $0x90] sm:$0xff] %vm990_vm6, %v955_v55 }
 0x1b3   : > { %2794 = vmatmul.mubr.msk.bf16.gmra.mrb[8].mxu1 %vm1843_vm12, %v1809_v7 }
 0x1b4   : > { %v1251_v53 = vpop.permute.xlu1 %1250 }
 0x1b5   : > { %v1249_v3 = vpop.permute.xlu0 %1248  ;;  %1304 = vst.msk [vmem:[#allocation2 + $0x98] sm:$0xff] %vm1284_vm7, %v1251_v53 }
 0x1b6   : > { %1303 = vst.msk [vmem:[#allocation2 + $0x90] sm:$0xff] %vm1284_vm7, %v1249_v3 }
 0x1b8   : > { %v1398_v44 = vpop.permute.xlu1 %1397 }
 0x1b9   : > { %v1396_v56 = vpop.permute.xlu0 %1395  ;;  %1451 = vst.msk [vmem:[#allocation2 + $0x98] sm:$0xff] %vm1431_vm8, %v1398_v44 }
 0x1ba   : > { %1450 = vst.msk [vmem:[#allocation2 + $0x90] sm:$0xff] %vm1431_vm8, %v1396_v56 }
 0x1bc   : > { %v1501_v28 = vpop.permute.xlu1 %1500 }
 0x1bd   : > { %v1499_v42 = vpop.permute.xlu0 %1498  ;;  %1554 = vst.msk [vmem:[#allocation2 + $0x98] sm:$0xff] %vm1534_vm9, %v1501_v28 }
 0x1be   : > { %1553 = vst.msk [vmem:[#allocation2 + $0x90] sm:$0xff] %vm1534_vm9, %v1499_v42 }
 0x1c0   : > { %v1628_v0 = vpop.permute.xlu1 %1627 }
 0x1c1   : > { %v1626_v23 = vpop.permute.xlu0 %1625  ;;  %1681 = vst.msk [vmem:[#allocation2 + $0x98] sm:$0xff] %vm1661_vm10, %v1628_v0 }
 0x1c2   : > { %1680 = vst.msk [vmem:[#allocation2 + $0x90] sm:$0xff] %vm1661_vm10, %v1626_v23 }
 0x1c4   : > { %v642_v13 = vpop.permute.xlu1 %641 }
 0x1c5   : > { %v1732_v47 = vpop.permute.xlu0 %1731  ;;  %v2771_v16 = vpop.f32.mrb[8].mxu0  ;;  %694 = vst.msk [vmem:[#allocation2 + $0xa0] sm:$0xff] %vm673_vm4, %v642_v13 }
 0x1c6   : > { %1786 = vst.msk [vmem:[#allocation2 + $0x90] sm:$0xff] %vm1767_vm11, %v1732_v47  ;;  %v1995_v49 = vadd.f32 %v2771_v16, %v4220_v29  ;;  %v1986_v37 = vpop.f32.mrb[9].mxu0 }
 0x1c7   : > { %v1987_v33 = vadd.f32 %v4220_v29, %v1986_v37  ;;  %v2772_v40 = vpop.f32.mrb[10].mxu0 }
 0x1c8   : > { %v2155_v52 = vmax.f32 %v1995_v49, 0.0  ;;  %v1998_v24 = vadd.f32 %v2772_v40, %v4220_v29  ;;  %v1989_v43 = vpop.f32.mrb[11].mxu0  ;;  %v644_v54 = vpop.permute.xlu1 %643 }
 0x1c9   : > { %v2153_v38 = vmax.f32 %v1987_v33, 0.0  ;;  %v1990_v34 = vadd.f32 %v4220_v29, %v1989_v43  ;;  %v1734_v11 = vpop.permute.xlu0 %1733  ;;  %695 = vst.msk [vmem:[#allocation2 + $0xa8] sm:$0xff] %vm673_vm4, %v644_v54 }
 0x1ca   : > { %2204 = vst.msk [vmem:[%s4234_s20 + $0x50] sm:$0xff] %vm2193_vm13, %v2155_v52  ;;  %v2156_v26 = vmax.f32 %v1998_v24, 0.0 }
 0x1cb   : > { %1787 = vst.msk [vmem:[#allocation2 + $0x98] sm:$0xff] %vm1767_vm11, %v1734_v11  ;;  %v2154_v62 = vmax.f32 %v1990_v34, 0.0 }
 0x1cc   : > { %2202 = vst.msk [vmem:[%s4234_s20 + $0x40] sm:$0xff] %vm2193_vm13, %v2153_v38  ;;  %2205 = vst.msk [vmem:[%s4234_s20 + $0x58] sm:$0xff] %vm2193_vm13, %v2156_v26  ;;  %v816_v31 = vpop.permute.xlu1 %815 }
 0x1cd   : > { %2203 = vst.msk [vmem:[%s4234_s20 + $0x48] sm:$0xff] %vm2193_vm13, %v2154_v62  ;;  %v2482_v48 = vadd.f32 %v2480_v41, %v2154_v62  ;;  %v814_v4 = vpop.permute.xlu0 %813  ;;  %v1810_v25 = vld [vmem:[#allocation2 + $0x90] sm:$0xff] }
 0x1ce   : > { %866 = vst.msk [vmem:[#allocation2 + $0xa0] sm:$0xff] %vm845_vm5, %v814_v4  ;;  %2797 = vmatprep.mubr.msk.bf16.mxu1 %vm1843_vm12, %v1810_v25  ;;  %867 = vst.msk [vmem:[#allocation2 + $0xa8] sm:$0xff] %vm845_vm5, %v816_v31 }
 0x1cf   : > { %v2483_v21 = vadd.f32 %v2482_v48, %v2155_v52 }
 0x1d0   : > { %v961_v22 = vpop.permute.xlu1 %960 }
 0x1d1   : > { %v959_v27 = vpop.permute.xlu0 %958  ;;  %1012 = vst.msk [vmem:[#allocation2 + $0xa8] sm:$0xff] %vm990_vm6, %v961_v22 }
 0x1d2   : > { %v1811_v50 = vld [vmem:[#allocation2 + $0x98] sm:$0xff]  ;;  %1011 = vst.msk [vmem:[#allocation2 + $0xa0] sm:$0xff] %vm990_vm6, %v959_v27 }
 0x1d3   : > { %2798 = vmatmul.mubr.msk.bf16.gmra.mrb[12].mxu1 %vm1843_vm12, %v1811_v50 }
 0x1d4   : > { %v1255_v10 = vpop.permute.xlu1 %1254 }
 0x1d5   : > { %v1253_v36 = vpop.permute.xlu0 %1252  ;;  %1306 = vst.msk [vmem:[#allocation2 + $0xa8] sm:$0xff] %vm1284_vm7, %v1255_v10 }
 0x1d6   : > { %1305 = vst.msk [vmem:[#allocation2 + $0xa0] sm:$0xff] %vm1284_vm7, %v1253_v36 }
 0x1d8   : > { %v1402_v19 = vpop.permute.xlu1 %1401 }
 0x1d9   : > { %v1400_v46 = vpop.permute.xlu0 %1399  ;;  %1453 = vst.msk [vmem:[#allocation2 + $0xa8] sm:$0xff] %vm1431_vm8, %v1402_v19 }
 0x1da   : > { %1452 = vst.msk [vmem:[#allocation2 + $0xa0] sm:$0xff] %vm1431_vm8, %v1400_v46 }
 0x1dc   : > { %v1505_v9 = vpop.permute.xlu1 %1504 }
 0x1dd   : > { %v1503_v63 = vpop.permute.xlu0 %1502  ;;  %1556 = vst.msk [vmem:[#allocation2 + $0xa8] sm:$0xff] %vm1534_vm9, %v1505_v9 }
 0x1de   : > { %1555 = vst.msk [vmem:[#allocation2 + $0xa0] sm:$0xff] %vm1534_vm9, %v1503_v63 }
 0x1e0   : > { %v1632_v30 = vpop.permute.xlu1 %1631 }
 0x1e1   : > { %v1630_v57 = vpop.permute.xlu0 %1629  ;;  %1683 = vst.msk [vmem:[#allocation2 + $0xa8] sm:$0xff] %vm1661_vm10, %v1632_v30 }
 0x1e2   : > { %1682 = vst.msk [vmem:[#allocation2 + $0xa0] sm:$0xff] %vm1661_vm10, %v1630_v57 }
 0x1e4   : > { %v2775_v12 = vpop.f32.mrb[12].mxu0  ;;  %v646_v60 = vpop.permute.xlu1 %645 }
 0x1e5   : > { %v1736_v35 = vpop.permute.xlu0 %1735  ;;  %v2011_v14 = vadd.f32 %v2775_v12, %v4220_v29  ;;  %v2002_v1 = vpop.f32.mrb[13].mxu0  ;;  %696 = vst.msk [vmem:[#allocation2 + $0xb0] sm:$0xff] %vm673_vm4, %v646_v60 }
 0x1e6   : > { %1788 = vst.msk [vmem:[#allocation2 + $0xa0] sm:$0xff] %vm1767_vm11, %v1736_v35  ;;  %v2003_v15 = vadd.f32 %v4220_v29, %v2002_v1  ;;  %v2776_v17 = vpop.f32.mrb[14].mxu0 }
 0x1e7   : > { %v2159_v6 = vmax.f32 %v2011_v14, 0.0  ;;  %v2014_v2 = vadd.f32 %v2776_v17, %v4220_v29  ;;  %v2005_v18 = vpop.f32.mrb[15].mxu0 }
 0x1e8   : > { %v2157_v8 = vmax.f32 %v2003_v15, 0.0  ;;  %v2006_v61 = vadd.f32 %v4220_v29, %v2005_v18  ;;  %v648_v5 = vpop.permute.xlu1 %647 }
 0x1e9   : > { %v1738_v39 = vpop.permute.xlu0 %1737  ;;  %2208 = vst.msk [vmem:[%s4234_s20 + $0x70] sm:$0xff] %vm2193_vm13, %v2159_v6  ;;  %v2160_v32 = vmax.f32 %v2014_v2, 0.0 }
 0x1ea   : > { %1789 = vst.msk [vmem:[#allocation2 + $0xa8] sm:$0xff] %vm1767_vm11, %v1738_v39  ;;  %v2485_v59 = vadd.f32 %v2483_v21, %v2157_v8  ;;  %v2158_v45 = vmax.f32 %v2006_v61, 0.0 }
 0x1eb   : > { %2206 = vst.msk [vmem:[%s4234_s20 + $0x60] sm:$0xff] %vm2193_vm13, %v2157_v8  ;;  %2209 = vst.msk [vmem:[%s4234_s20 + $0x78] sm:$0xff] %vm2193_vm13, %v2160_v32 }
 0x1ec   : > { %697 = vst.msk [vmem:[#allocation2 + $0xb8] sm:$0xff] %vm673_vm4, %v648_v5  ;;  %v2486_v51 = vadd.f32 %v2485_v59, %v2158_v45  ;;  %v820_v55 = vpop.permute.xlu1 %819 }
 0x1ed   : > { %2207 = vst.msk [vmem:[%s4234_s20 + $0x68] sm:$0xff] %vm2193_vm13, %v2158_v45  ;;  %v818_v20 = vpop.permute.xlu0 %817  ;;  %v1812_v41 = vld [vmem:[#allocation2 + $0xa0] sm:$0xff] }
 0x1ee   : > { %868 = vst.msk [vmem:[#allocation2 + $0xb0] sm:$0xff] %vm845_vm5, %v818_v20  ;;  %2801 = vmatprep.mubr.msk.bf16.mxu1 %vm1843_vm12, %v1812_v41  ;;  %869 = vst.msk [vmem:[#allocation2 + $0xb8] sm:$0xff] %vm845_vm5, %v820_v55  ;;  %v2488_v7 = vadd.f32 %v2486_v51, %v2160_v32 }
 0x1f0   : > { %v965_v53 = vpop.permute.xlu1 %964 }
 0x1f1   : > { %v963_v58 = vpop.permute.xlu0 %962  ;;  %v1813_v3 = vld [vmem:[#allocation2 + $0xa8] sm:$0xff]  ;;  %1014 = vst.msk [vmem:[#allocation2 + $0xb8] sm:$0xff] %vm990_vm6, %v965_v53 }
 0x1f2   : > { %1013 = vst.msk [vmem:[#allocation2 + $0xb0] sm:$0xff] %vm990_vm6, %v963_v58  ;;  %2802 = vmatmul.mubr.msk.bf16.gmra.mrb[16].mxu1 %vm1843_vm12, %v1813_v3 }
 0x1f4   : > { %v1259_v44 = vpop.permute.xlu1 %1258 }
 0x1f5   : > { %v1257_v56 = vpop.permute.xlu0 %1256  ;;  %1308 = vst.msk [vmem:[#allocation2 + $0xb8] sm:$0xff] %vm1284_vm7, %v1259_v44 }
 0x1f6   : > { %1307 = vst.msk [vmem:[#allocation2 + $0xb0] sm:$0xff] %vm1284_vm7, %v1257_v56 }
 0x1f8   : > { %v1406_v28 = vpop.permute.xlu1 %1405 }
 0x1f9   : > { %v1404_v42 = vpop.permute.xlu0 %1403  ;;  %1455 = vst.msk [vmem:[#allocation2 + $0xb8] sm:$0xff] %vm1431_vm8, %v1406_v28 }
 0x1fa   : > { %1454 = vst.msk [vmem:[#allocation2 + $0xb0] sm:$0xff] %vm1431_vm8, %v1404_v42  ;;  %v2920_v42 = vmov 0.0  }
 0x1fb   : > { %243 = vst.msk [vmem:[%s4425_s23] sm:$0x1] %vm242_vm14, %v2920_v42 }
 0x1fc   : > { %v1509_v0 = vpop.permute.xlu1 %1508 }
 0x1fd   : > { %v1507_v23 = vpop.permute.xlu0 %1506  ;;  %1558 = vst.msk [vmem:[#allocation2 + $0xb8] sm:$0xff] %vm1534_vm9, %v1509_v0 }
 0x1fe   : > { %1557 = vst.msk [vmem:[#allocation2 + $0xb0] sm:$0xff] %vm1534_vm9, %v1507_v23 }
 0x200   : > { %v1636_v16 = vpop.permute.xlu1 %1635 }
 0x201   : > { %v1634_v47 = vpop.permute.xlu0 %1633  ;;  %1685 = vst.msk [vmem:[#allocation2 + $0xb8] sm:$0xff] %vm1661_vm10, %v1636_v16 }
 0x202   : > { %1684 = vst.msk [vmem:[#allocation2 + $0xb0] sm:$0xff] %vm1661_vm10, %v1634_v47 }
 0x204   : > { %v1742_v13 = vpop.permute.xlu1 %1741 }
 0x205   : > { %v1740_v49 = vpop.permute.xlu0 %1739  ;;  %1791 = vst.msk [vmem:[#allocation2 + $0xb8] sm:$0xff] %vm1767_vm11, %v1742_v13 }
 0x206   : > { %1790 = vst.msk [vmem:[#allocation2 + $0xb0] sm:$0xff] %vm1767_vm11, %v1740_v49 }
 0x20c   : > { %v1815_v33 = vld [vmem:[#allocation2 + $0xb8] sm:$0xff] }
 0x20d   : > { %v1814_v37 = vld [vmem:[#allocation2 + $0xb0] sm:$0xff] }
 0x20e   : > { %2805 = vmatprep.mubr.msk.bf16.mxu1 %vm1843_vm12, %v1814_v37 }
 0x20f   : > { %2806 = vmatmul.mubr.msk.bf16.gmra.mrb[20].mxu1 %vm1843_vm12, %v1815_v33 }
 0x224   : > { %v2787_v52 = vpop.f32.mrb[0].mxu1 }
 0x225   : > { %v2779_v40 = vpop.f32.mrb[16].mxu0  ;;  %v2059_v43 = vadd.f32 %v2787_v52, %v4220_v29  ;;  %v2050_v34 = vpop.f32.mrb[1].mxu1 }
 0x226   : > { %v2027_v24 = vadd.f32 %v2779_v40, %v4220_v29  ;;  %v2018_v38 = vpop.f32.mrb[17].mxu0  ;;  %v4379_v26 = vadd.f32 %v4220_v29, %v2050_v34  ;;  %v2788_v62 = vpop.f32.mrb[2].mxu1 }
 0x227   : > { %v2019_v11 = vadd.f32 %v4220_v29, %v2018_v38  ;;  %v2780_v54 = vpop.f32.mrb[18].mxu0  ;;  %v2171_v4 = vmax.f32 %v2059_v43, 0.0  ;;  %v4383_v31 = vadd.f32 %v2788_v62, %v4220_v29  ;;  %v2053_v27 = vpop.f32.mrb[3].mxu1 }
 0x228   : > { %v2163_v48 = vmax.f32 %v2027_v24, 0.0  ;;  %v2030_v25 = vadd.f32 %v2780_v54, %v4220_v29  ;;  %v2021_v21 = vpop.f32.mrb[19].mxu0  ;;  %v2169_v22 = vmax.f32 %v4379_v26, 0.0  ;;  %v2054_v10 = vadd.f32 %v4220_v29, %v2053_v27 }
 0x229   : > { %v2161_v50 = vmax.f32 %v2019_v11, 0.0  ;;  %v2022_v36 = vadd.f32 %v4220_v29, %v2021_v21  ;;  %2220 = vst.msk [vmem:[%s4234_s20 + $0xd0] sm:$0xff] %vm2193_vm13, %v2171_v4  ;;  %v2172_v19 = vmax.f32 %v4383_v31, 0.0 }
 0x22a   : > { %2212 = vst.msk [vmem:[%s4234_s20 + $0x90] sm:$0xff] %vm2193_vm13, %v2163_v48  ;;  %v2164_v46 = vmax.f32 %v2030_v25, 0.0  ;;  %2218 = vst.msk [vmem:[%s4234_s20 + $0xc0] sm:$0xff] %vm2193_vm13, %v2169_v22  ;;  %v2170_v57 = vmax.f32 %v2054_v10, 0.0 }
 0x22b   : > { %2210 = vst.msk [vmem:[%s4234_s20 + $0x80] sm:$0xff] %vm2193_vm13, %v2161_v50  ;;  %v2489_v63 = vadd.f32 %v2488_v7, %v2161_v50  ;;  %v2162_v9 = vmax.f32 %v2022_v36, 0.0  ;;  %2221 = vst.msk [vmem:[%s4234_s20 + $0xd8] sm:$0xff] %vm2193_vm13, %v2172_v19 }
 0x22c   : > { %2213 = vst.msk [vmem:[%s4234_s20 + $0x98] sm:$0xff] %vm2193_vm13, %v2164_v46  ;;  %2219 = vst.msk [vmem:[%s4234_s20 + $0xc8] sm:$0xff] %vm2193_vm13, %v2170_v57 }
 0x22d   : > { %v2491_v30 = vadd.f32 %v2489_v63, %v2163_v48  ;;  %2211 = vst.msk [vmem:[%s4234_s20 + $0x88] sm:$0xff] %vm2193_vm13, %v2162_v9 }
 0x22f   : > { %v2492_v35 = vadd.f32 %v2491_v30, %v2164_v46 }
 0x260   : > { %v2783_v12 = vpop.f32.mrb[20].mxu0 }
 0x261   : > { %v2043_v14 = vadd.f32 %v2783_v12, %v4220_v29  ;;  %v2034_v60 = vpop.f32.mrb[21].mxu0 }
 0x262   : > { %v2035_v1 = vadd.f32 %v4220_v29, %v2034_v60  ;;  %v2784_v15 = vpop.f32.mrb[22].mxu0 }
 0x263   : > { %v2167_v17 = vmax.f32 %v2043_v14, 0.0  ;;  %v2046_v6 = vadd.f32 %v2784_v15, %v4220_v29  ;;  %v2037_v2 = vpop.f32.mrb[23].mxu0 }
 0x264   : > { %v2165_v18 = vmax.f32 %v2035_v1, 0.0  ;;  %v2038_v8 = vadd.f32 %v4220_v29, %v2037_v2 }
 0x265   : > { %v2791_v61 = vpop.f32.mrb[4].mxu1  ;;  %2216 = vst.msk [vmem:[%s4234_s20 + $0xb0] sm:$0xff] %vm2193_vm13, %v2167_v17  ;;  %v2168_v39 = vmax.f32 %v2046_v6, 0.0 }
 0x266   : > { %v2075_v32 = vadd.f32 %v2791_v61, %v4220_v29  ;;  %v2066_v5 = vpop.f32.mrb[5].mxu1  ;;  %2214 = vst.msk [vmem:[%s4234_s20 + $0xa0] sm:$0xff] %vm2193_vm13, %v2165_v18  ;;  %v2166_v59 = vmax.f32 %v2038_v8, 0.0 }
 0x267   : > { %v2067_v45 = vadd.f32 %v4220_v29, %v2066_v5  ;;  %v2792_v51 = vpop.f32.mrb[6].mxu1  ;;  %2217 = vst.msk [vmem:[%s4234_s20 + $0xb8] sm:$0xff] %vm2193_vm13, %v2168_v39 }
 0x268   : > { %v2175_v20 = vmax.f32 %v2075_v32, 0.0  ;;  %v2078_v41 = vadd.f32 %v2792_v51, %v4220_v29  ;;  %v2069_v55 = vpop.f32.mrb[7].mxu1  ;;  %2215 = vst.msk [vmem:[%s4234_s20 + $0xa8] sm:$0xff] %vm2193_vm13, %v2166_v59  ;;  %v2494_v7 = vadd.f32 %v2492_v35, %v2166_v59 }
 0x269   : > { %v2173_v58 = vmax.f32 %v2067_v45, 0.0  ;;  %v2070_v3 = vadd.f32 %v4220_v29, %v2069_v55 }
 0x26a   : > { %2224 = vst.msk [vmem:[%s4234_s20 + $0xf0] sm:$0xff] %vm2193_vm13, %v2175_v20  ;;  %v2176_v53 = vmax.f32 %v2078_v41, 0.0  ;;  %v2495_v56 = vadd.f32 %v2494_v7, %v2167_v17 }
 0x26b   : > { %2222 = vst.msk [vmem:[%s4234_s20 + $0xe0] sm:$0xff] %vm2193_vm13, %v2173_v58  ;;  %v2174_v44 = vmax.f32 %v2070_v3, 0.0 }
 0x26c   : > { %2225 = vst.msk [vmem:[%s4234_s20 + $0xf8] sm:$0xff] %vm2193_vm13, %v2176_v53  ;;  %v2497_v28 = vadd.f32 %v2495_v56, %v2169_v22 }
 0x26d   : > { %2223 = vst.msk [vmem:[%s4234_s20 + $0xe8] sm:$0xff] %vm2193_vm13, %v2174_v44 }
 0x26e   : > { %v2498_v23 = vadd.f32 %v2497_v28, %v2170_v57 }
 0x270   : > { %v2500_v0 = vadd.f32 %v2498_v23, %v2172_v19 }
 0x272   : > { %v2501_v47 = vadd.f32 %v2500_v0, %v2173_v58 }
 0x274   : > { %v2503_v16 = vadd.f32 %v2501_v47, %v2175_v20 }
 0x276   : > { %v2504_v49 = vadd.f32 %v2503_v16, %v2176_v53 }
 0x286   : > { %v2795_v13 = vpop.f32.mrb[8].mxu1 }
 0x287   : > { %v2091_v37 = vadd.f32 %v2795_v13, %v4220_v29  ;;  %v2082_v33 = vpop.f32.mrb[9].mxu1  ;;  %v2527_v13 = vld [vmem:[%s4425_s23] sm:$0x1] }
 0x288   : > { %v2083_v40 = vadd.f32 %v4220_v29, %v2082_v33  ;;  %v2796_v52 = vpop.f32.mrb[10].mxu1 }
 0x289   : > { %v2179_v24 = vmax.f32 %v2091_v37, 0.0  ;;  %v2094_v43 = vadd.f32 %v2796_v52, %v4220_v29  ;;  %v2085_v38 = vpop.f32.mrb[11].mxu1 }
 0x28a   : > { %v2177_v34 = vmax.f32 %v2083_v40, 0.0  ;;  %v2086_v11 = vadd.f32 %v4220_v29, %v2085_v38 }
 0x28b   : > { %2228 = vst.msk [vmem:[%s4234_s20 + $0x110] sm:$0xff] %vm2193_vm13, %v2179_v24  ;;  %v2180_v26 = vmax.f32 %v2094_v43, 0.0 }
 0x28c   : > { %2226 = vst.msk [vmem:[%s4234_s20 + $0x100] sm:$0xff] %vm2193_vm13, %v2177_v34  ;;  %v2178_v54 = vmax.f32 %v2086_v11, 0.0 }
 0x28d   : > { %2229 = vst.msk [vmem:[%s4234_s20 + $0x118] sm:$0xff] %vm2193_vm13, %v2180_v26 }
 0x28e   : > { %2227 = vst.msk [vmem:[%s4234_s20 + $0x108] sm:$0xff] %vm2193_vm13, %v2178_v54  ;;  %v2506_v62 = vadd.f32 %v2504_v49, %v2178_v54 }
 0x290   : > { %v2507_v48 = vadd.f32 %v2506_v62, %v2179_v24 }
 0x2a6   : > { %v2799_v4 = vpop.f32.mrb[12].mxu1 }
 0x2a7   : > { %v2107_v25 = vadd.f32 %v2799_v4, %v4220_v29  ;;  %v2098_v31 = vpop.f32.mrb[13].mxu1 }
 0x2a8   : > { %v2099_v21 = vadd.f32 %v4220_v29, %v2098_v31  ;;  %v2800_v27 = vpop.f32.mrb[14].mxu1 }
 0x2a9   : > { %v2183_v50 = vmax.f32 %v2107_v25, 0.0  ;;  %v2110_v22 = vadd.f32 %v2800_v27, %v4220_v29  ;;  %v2101_v36 = vpop.f32.mrb[15].mxu1 }
 0x2aa   : > { %v2181_v10 = vmax.f32 %v2099_v21, 0.0  ;;  %v2102_v46 = vadd.f32 %v4220_v29, %v2101_v36 }
 0x2ab   : > { %2232 = vst.msk [vmem:[%s4234_s20 + $0x130] sm:$0xff] %vm2193_vm13, %v2183_v50  ;;  %v2184_v19 = vmax.f32 %v2110_v22, 0.0 }
 0x2ac   : > { %2230 = vst.msk [vmem:[%s4234_s20 + $0x120] sm:$0xff] %vm2193_vm13, %v2181_v10  ;;  %v2509_v63 = vadd.f32 %v2507_v48, %v2181_v10  ;;  %v2182_v9 = vmax.f32 %v2102_v46, 0.0 }
 0x2ad   : > { %2233 = vst.msk [vmem:[%s4234_s20 + $0x138] sm:$0xff] %vm2193_vm13, %v2184_v19 }
 0x2ae   : > { %2231 = vst.msk [vmem:[%s4234_s20 + $0x128] sm:$0xff] %vm2193_vm13, %v2182_v9  ;;  %v2510_v57 = vadd.f32 %v2509_v63, %v2182_v9 }
 0x2b0   : > { %v2512_v30 = vadd.f32 %v2510_v57, %v2184_v19 }
 0x2c5   : > { %v2803_v35 = vpop.f32.mrb[16].mxu1 }
 0x2c6   : > { %v2123_v12 = vadd.f32 %v2803_v35, %v4220_v29  ;;  %v2114_v14 = vpop.f32.mrb[17].mxu1 }
 0x2c7   : > { %v2115_v60 = vadd.f32 %v4220_v29, %v2114_v14  ;;  %v2804_v1 = vpop.f32.mrb[18].mxu1 }
 0x2c8   : > { %v2187_v15 = vmax.f32 %v2123_v12, 0.0  ;;  %v2126_v17 = vadd.f32 %v2804_v1, %v4220_v29  ;;  %v2117_v6 = vpop.f32.mrb[19].mxu1 }
 0x2c9   : > { %v2185_v2 = vmax.f32 %v2115_v60, 0.0  ;;  %v2118_v18 = vadd.f32 %v4220_v29, %v2117_v6 }
 0x2ca   : > { %2236 = vst.msk [vmem:[%s4234_s20 + $0x150] sm:$0xff] %vm2193_vm13, %v2187_v15  ;;  %v2188_v8 = vmax.f32 %v2126_v17, 0.0 }
 0x2cb   : > { %2234 = vst.msk [vmem:[%s4234_s20 + $0x140] sm:$0xff] %vm2193_vm13, %v2185_v2  ;;  %v2513_v61 = vadd.f32 %v2512_v30, %v2185_v2  ;;  %v2186_v39 = vmax.f32 %v2118_v18, 0.0 }
 0x2cc   : > { %2237 = vst.msk [vmem:[%s4234_s20 + $0x158] sm:$0xff] %vm2193_vm13, %v2188_v8 }
 0x2cd   : > { %v2515_v32 = vadd.f32 %v2513_v61, %v2187_v15  ;;  %2235 = vst.msk [vmem:[%s4234_s20 + $0x148] sm:$0xff] %vm2193_vm13, %v2186_v39 }
 0x2cf   : > { %v2516_v5 = vadd.f32 %v2515_v32, %v2188_v8 }
 0x2e2   : > { %v2807_v59 = vpop.f32.mrb[20].mxu1 }
 0x2e3   : > { %v2139_v45 = vadd.f32 %v2807_v59, %v4220_v29  ;;  %v2130_v51 = vpop.f32.mrb[21].mxu1 }
 0x2e4   : > { %v2131_v20 = vadd.f32 %v4220_v29, %v2130_v51  ;;  %v2808_v41 = vpop.f32.mrb[22].mxu1 }
 0x2e5   : > { %v2191_v55 = vmax.f32 %v2139_v45, 0.0  ;;  %v2142_v7 = vadd.f32 %v2808_v41, %v4220_v29  ;;  %v2133_v58 = vpop.f32.mrb[23].mxu1 }
 0x2e6   : > { %v2189_v3 = vmax.f32 %v2131_v20, 0.0  ;;  %v2134_v53 = vadd.f32 %v4220_v29, %v2133_v58 }
 0x2e7   : > { %2240 = vst.msk [vmem:[%s4234_s20 + $0x170] sm:$0xff] %vm2193_vm13, %v2191_v55  ;;  %v2192_v56 = vmax.f32 %v2142_v7, 0.0 }
 0x2e8   : > { %2238 = vst.msk [vmem:[%s4234_s20 + $0x160] sm:$0xff] %vm2193_vm13, %v2189_v3  ;;  %v2190_v44 = vmax.f32 %v2134_v53, 0.0 }
 0x2e9   : > { %2241 = vst.msk [vmem:[%s4234_s20 + $0x178] sm:$0xff] %vm2193_vm13, %v2192_v56 }
 0x2ea   : > { %2239 = vst.msk [vmem:[%s4234_s20 + $0x168] sm:$0xff] %vm2193_vm13, %v2190_v44  ;;  %v2518_v42 = vadd.f32 %v2516_v5, %v2190_v44 }
 0x2ec   : > { %v2519_v28 = vadd.f32 %v2518_v42, %v2191_v55 }
 0x2ee   : > { %v2521_v23 = vrot.slane %v2519_v28, 4 }
 0x2f0   : > { %v2522_v0 = vadd.f32 %v2521_v23, %v2519_v28 }
 0x2f2   : > { %v2523_v47 = vrot.slane %v2522_v0, 2 }
 0x2f4   : > { %v2524_v16 = vadd.f32 %v2523_v47, %v2522_v0 }
 0x2f6   : > { %v2525_v49 = vrot.slane %v2524_v16, 1 }
 0x2f8   : > { %v2526_v29 = vadd.f32 %v2525_v49, %v2524_v16 }
 0x2fa   : > { %v2528_v37 = vadd.f32 %v2527_v13, %v2526_v29 }
 0x2fc   : > { %2530 = vst.msk [vmem:[%s4425_s23] sm:$0x1] %vm242_vm14, %v2528_v37 }
 0x2fd PF: > { %s15_s17 = sadd.s32 1, %s2910_s17   ;;  %s4506_s15 = smov %s2906_s16 }
 0x2fe   : > { %p12_p5 = scmp.ge.s32.totalorder %s15_s17, 4   ;;  %s4507_s16 = smov %s4509_s18 }
 0x300   :  { %14 = sbr.rel (!%p12_p5) target bundleno = 2 (0x2), region = 78 }

</bundles_post_ra>
